<compile_context>
chip_gen: v5e
topology: v5e:2x2
jax: 0.10.0
libtpu: 0.0.40
codegen_flags: <defaults>
</compile_context>

<pallas_src>
import math

import jax
import jax.numpy as jnp
from jax.experimental import pallas as pl
from jax.experimental.pallas import tpu as pltpu


_MXU_MIN_K = 64                       # below this, the 1x1-conv runs on the VPU as an FMA chain
_MAX_TILE_S = 2048                    # lane-tile cap; >=512 already ~85% of HBM roofline
_VMEM_BLOCK_BUDGET = 36 * 1024 * 1024  # double-buffered block budget (fits v7x 64 MiB physical)


def _r8(n):
    return -(-int(n) // 8) * 8


def _r128(n):
    return -(-int(n) // 128) * 128


# ----------------------------------------------------------------------------
# Fused kernel: 1x1 conv (transposed / lane-dense) + sine position embedding
# ----------------------------------------------------------------------------
def _make_fused_kernel(Cin, Cout, Pp, Ts):
    def kernel(x_ref, wt_ref, b_ref, emb_ref, coef_ref, phase_ref, xc_ref, pos_ref):
        # x_ref   : (1, Cin, Ts)   input feature tile, spatial on lanes
        # wt_ref  : (Cout, Cin)    transposed 1x1-conv weight (resident)
        # b_ref   : (Cout, 1)      bias (resident)
        # emb_ref : (1, 2, Ts)     [y_embed | x_embed] rows for this tile
        # coef_ref, phase_ref : (Pp, 1)  1/dim_t and sin-phase (0 or pi/2)
        # xc_ref  : (1, Cout, Ts)  projection output (NC(S) layout -> NCHW for free)
        # pos_ref : (1, 2*Pp, Ts)  position embedding output (y rows then x rows)

        # ---- coupling: out[co, s] = sum_c w[co, c] * x[c, s] + b[co] ----------
        if Cin >= _MXU_MIN_K:
            # Real DETR channel counts: keep it MXU-shaped, f32 accumulate.
            acc = jnp.dot(wt_ref[...], x_ref[0],
                          preferred_element_type=jnp.float32)
            acc = acc + b_ref[...].astype(jnp.float32)
        else:
            # Tiny contraction: VPU broadcast FMA chain (statically unrolled),
            # bias + first product fold into the accumulator init (no zero-fill).
            wt = wt_ref[...].astype(jnp.float32)
            xt = x_ref[0].astype(jnp.float32)
            acc = b_ref[...].astype(jnp.float32) + wt[:, 0:1] * xt[0:1, :]
            for c in range(1, Cin):
                acc = acc + wt[:, c:c + 1] * xt[c:c + 1, :]
        xc_ref[0] = acc.astype(xc_ref.dtype)

        # ---- sine position embedding: sin(embed * inv_dim_t + phase) ----------
        coef = coef_ref[...]                     # (Pp, 1)
        phase = phase_ref[...]                   # (Pp, 1)
        ye = emb_ref[0, 0:1, :]                  # (1, Ts)
        xe = emb_ref[0, 1:2, :]                  # (1, Ts)
        pos_ref[0, 0:Pp, :] = jnp.sin(ye * coef + phase).astype(pos_ref.dtype)
        pos_ref[0, Pp:2 * Pp, :] = jnp.sin(xe * coef + phase).astype(pos_ref.dtype)

    return kernel


# ----------------------------------------------------------------------------
# VMEM-aware tiling
# ----------------------------------------------------------------------------
def _plan_tiling(S, Cin, Cout, Pp):
    """Pick (Ts, Sp, vmem_limit_bytes) from a per-generation-safe VMEM budget."""
    # Double-buffered, per-lane bytes of all grid-varying blocks (f32).
    per_lane = 2 * 4 * (_r8(Cin) + _r8(2) + _r8(Cout) + _r8(2 * Pp))
    # Resident (grid-constant) blocks, padded to (8, 128) tiles, double-buffered.
    resident = 2 * 4 * (_r8(Cout) * _r128(Cin)      # w_t
                        + _r8(Cout) * 128           # bias
                        + 2 * _r8(Pp) * 128)        # coef + phase
    budget = max(_VMEM_BLOCK_BUDGET - resident, 2 * 1024 * 1024)
    ts_max = max(128, (budget // per_lane) // 128 * 128)
    Ts = min(ts_max, _r128(S), _MAX_TILE_S)
    Sp = -(-S // Ts) * Ts                            # pad ragged S up to a multiple of Ts
    usage = resident + per_lane * Ts
    vmem_limit = int(usage * 1.25) + (1 << 20)       # ~20-25% headroom
    vmem_limit = min(max(vmem_limit, 16 * 1024 * 1024), 56 * 1024 * 1024)
    return Ts, Sp, vmem_limit


# ----------------------------------------------------------------------------
# Glue: nearest-neighbor mask resize (F.interpolate default mode='nearest')
# ----------------------------------------------------------------------------
def interpolate_mask_nearest(mask, out_hw):
    B, Hin, Win = mask.shape
    Hout, Wout = out_hw
    if (Hin, Win) == (Hout, Wout):
        return mask                                  # identity after a 1x1 conv -> skip gathers
    ridx = (jnp.arange(Hout) * (Hin / Hout)).astype(jnp.int32)
    cidx = (jnp.arange(Wout) * (Win / Wout)).astype(jnp.int32)
    return mask[:, ridx][:, :, cidx]


# ----------------------------------------------------------------------------
# StageJoiner forward
# ----------------------------------------------------------------------------
def stage_joiner_forward(tensors, mask, params, *, num_pos_feats,
                         temperature=10000.0, normalize=True, scale=None):
    """tensors: (B,Cin,H,W), mask: (B,H,W) bool (True == padding).
    params: {"w_t": (Cout, Cin) transposed 1x1-conv weight, "b": (Cout,)}."""
    if scale is None:
        scale = 2.0 * math.pi
    B, Cin, H, W = tensors.shape
    Cout = params["w_t"].shape[0]
    P = int(num_pos_feats)            # static (jit static_argnames)
    Pp = _r8(P)                       # sublane-aligned internal pos-feature count
    S = H * W
    dtype = tensors.dtype
    # NOTE: if Cout % 8 != 0 the (1, Cout, Ts) output block falls back to masked
    # stores (correct, slower); DETR configs use Cout=256 so this never triggers.

    # mask resized to xc's spatial size (identity for a 1x1 conv, kept for fidelity)
    mask_i = interpolate_mask_nearest(mask, (H, W))

    # cumsum-based normalized y/x embeddings (tiny scan-shaped plain-JAX glue)
    not_mask = (~mask_i).astype(jnp.float32)
    y_embed = jnp.cumsum(not_mask, axis=1)
    x_embed = jnp.cumsum(not_mask, axis=2)
    if normalize:
        eps = 1e-6
        y_embed = y_embed / (y_embed[:, -1:, :] + eps) * scale
        x_embed = x_embed / (x_embed[:, :, -1:] + eps) * scale
    emb = jnp.stack([y_embed, x_embed], axis=1).reshape(B, 2, S)   # (B, 2, S)

    # per-channel sine coefficients: 1/dim_t and phase (cos(x) == sin(x + pi/2)),
    # built at the padded width Pp (extra rows are zeros, sliced off below).
    j = jnp.arange(Pp, dtype=jnp.float32)
    dim_t = jnp.power(jnp.float32(temperature),
                      2.0 * jnp.floor(j / 2.0) / jnp.float32(P))
    valid = jnp.arange(Pp) < P
    inv_dim_t = jnp.where(valid, 1.0 / dim_t, 0.0).reshape(Pp, 1)
    phase = jnp.where((jnp.arange(Pp) % 2 == 1) & valid,
                      jnp.float32(0.5 * math.pi), jnp.float32(0.0)).reshape(Pp, 1)

    x_flat = tensors.reshape(B, Cin, S)              # NCHW -> NC(S), free reshape
    w_t = jnp.asarray(params["w_t"])                 # (Cout, Cin), precomputed outside jit
    bias = jnp.asarray(params["b"]).reshape(Cout, 1)

    Ts, Sp, vmem_limit = _plan_tiling(S, Cin, Cout, Pp)
    if Sp != S:                                      # ragged S: pad to a multiple of Ts
        x_flat = jnp.pad(x_flat, ((0, 0), (0, 0), (0, Sp - S)))
        emb = jnp.pad(emb, ((0, 0), (0, 0), (0, Sp - S)))

    num_s = Sp // Ts
    b_first = B >= num_s                             # larger axis first -> both v7x TCs busy

    def _im(f):                                      # wrap an (b, s)-style index_map
        if b_first:
            return lambda b, s: f(b, s)
        return lambda s, b: f(b, s)

    grid = (B, num_s) if b_first else (num_s, B)

    xc_flat, pos_flat = pl.pallas_call(
        _make_fused_kernel(Cin, Cout, Pp, Ts),
        out_shape=(jax.ShapeDtypeStruct((B, Cout, Sp), dtype),
                   jax.ShapeDtypeStruct((B, 2 * Pp, Sp), dtype)),
        grid_spec=pltpu.PrefetchScalarGridSpec(
            num_scalar_prefetch=0,
            grid=grid,
            in_specs=[
                pl.BlockSpec((1, Cin, Ts), _im(lambda b, s: (b, 0, s))),
                pl.BlockSpec((Cout, Cin), _im(lambda b, s: (0, 0))),
                pl.BlockSpec((Cout, 1), _im(lambda b, s: (0, 0))),
                pl.BlockSpec((1, 2, Ts), _im(lambda b, s: (b, 0, s))),
                pl.BlockSpec((Pp, 1), _im(lambda b, s: (0, 0))),
                pl.BlockSpec((Pp, 1), _im(lambda b, s: (0, 0))),
            ],
            out_specs=[
                pl.BlockSpec((1, Cout, Ts), _im(lambda b, s: (b, 0, s))),
                pl.BlockSpec((1, 2 * Pp, Ts), _im(lambda b, s: (b, 0, s))),
            ],
        ),
        compiler_params=pltpu.CompilerParams(
            dimension_semantics=("parallel", "parallel"),
            vmem_limit_bytes=vmem_limit),
    )(x_flat, w_t, bias, emb, inv_dim_t, phase)

    # strip internal padding (no-ops for the common aligned case)
    if Pp != P:
        pos_flat = jnp.concatenate(
            [pos_flat[:, 0:P, :], pos_flat[:, Pp:Pp + P, :]], axis=1)
    if Sp != S:
        xc_flat = xc_flat[:, :, :S]
        pos_flat = pos_flat[:, :, :S]

    xc = xc_flat.reshape(B, Cout, H, W)              # free reshape (contiguous)
    pos = pos_flat.reshape(B, 2 * P, H, W).astype(xc.dtype)
    out = [(xc, mask_i)]                             # NestedTensor(xc, mask)
    return out, [pos]


# ----------------------------------------------------------------------------
# Pure-JAX references for validation
# ----------------------------------------------------------------------------
def _reference_pos_embed(mask, P, temperature=10000.0, scale=2.0 * math.pi):
    B, H, W = mask.shape
    not_mask = (~mask).astype(jnp.float32)
    y_embed = jnp.cumsum(not_mask, axis=1)
    x_embed = jnp.cumsum(not_mask, axis=2)
    eps = 1e-6
    y_embed = y_embed / (y_embed[:, -1:, :] + eps) * scale
    x_embed = x_embed / (x_embed[:, :, -1:] + eps) * scale
    dim_t = jnp.power(jnp.float32(temperature),
                      2.0 * (jnp.arange(P) // 2).astype(jnp.float32) / P)
    pos_x = x_embed[..., None] / dim_t
    pos_y = y_embed[..., None] / dim_t
    pos_x = jnp.stack([jnp.sin(pos_x[..., 0::2]), jnp.cos(pos_x[..., 1::2])],
                      axis=4).reshape(B, H, W, P)
    pos_y = jnp.stack([jnp.sin(pos_y[..., 0::2]), jnp.cos(pos_y[..., 1::2])],
                      axis=4).reshape(B, H, W, P)
    return jnp.transpose(jnp.concatenate([pos_y, pos_x], axis=3), (0, 3, 1, 2))


if __name__ == "__main__":
    B, Cin, H, W = 2, 4, 16, 16
    hidden = 32                      # Cout of the coupling conv
    num_pos_feats = hidden // 2      # DETR convention

    key = jax.random.PRNGKey(0)
    kx, kw, kb = jax.random.split(key, 3)

    x = jax.random.normal(kx, (B, Cin, H, W), dtype=jnp.float32)
    w = 0.1 * jax.random.normal(kw, (Cin, hidden), dtype=jnp.float32)
    b = 0.01 * jax.random.normal(kb, (hidden,), dtype=jnp.float32)

    # padding mask: True marks padded pixels (right / bottom strips)
    cols = jnp.arange(W)[None, None, :]
    rows = jnp.arange(H)[None, :, None]
    mask = jnp.broadcast_to((cols >= 13) | (rows >= 14), (B, H, W))

    # weight transpose precomputed ONCE, outside the jitted path
    params = {"w_t": jnp.asarray(w).T, "b": b}

    fwd = jax.jit(stage_joiner_forward, static_argnames=("num_pos_feats",))
    out_list, pos_list = fwd(x, mask, params, num_pos_feats=num_pos_feats)
    xc, mask_out = out_list[0]
    pos = pos_list[0]
    jax.block_until_ready((xc, mask_out, pos))

    assert xc.shape == (B, hidden, H, W) and xc.dtype == jnp.float32
    assert mask_out.shape == (B, H, W) and mask_out.dtype == jnp.bool_
    assert pos.shape == (B, 2 * num_pos_feats, H, W) and pos.dtype == xc.dtype

    # coupling (1x1 conv) reference
    ref_xc = jnp.einsum("bchw,cd->bdhw", x, w) + b[None, :, None, None]
    assert jnp.allclose(xc, ref_xc, atol=1e-5), float(jnp.max(jnp.abs(xc - ref_xc)))

    # sine position-embedding reference (stack/flatten interleave like DETR)
    ref_pos = _reference_pos_embed(mask, num_pos_feats)
    assert jnp.allclose(pos, ref_pos, atol=1e-4), float(jnp.max(jnp.abs(pos - ref_pos)))

    print("KERNEL_OK")
</pallas_src>

<mosaic_0001>
module attributes {stable_mosaic.version = 11 : i64} {
  func.func @kernel(%arg0: i32, %arg1: i32, %arg2: memref<1x4x256xf32, #tpu.memory_space<vmem>>, %arg3: memref<32x4xf32, #tpu.memory_space<vmem>>, %arg4: memref<32x1xf32, #tpu.memory_space<vmem>>, %arg5: memref<1x2x256xf32, #tpu.memory_space<vmem>>, %arg6: memref<16x1xf32, #tpu.memory_space<vmem>>, %arg7: memref<16x1xf32, #tpu.memory_space<vmem>>, %arg8: memref<1x32x256xf32, #tpu.memory_space<vmem>>, %arg9: memref<1x32x256xf32, #tpu.memory_space<vmem>>) attributes {dimension_semantics = [#tpu.dimension_semantics<parallel>, #tpu.dimension_semantics<parallel>], iteration_bounds = array<i64: 2, 1>, scalar_prefetch = 0 : i64, scratch_operands = 0 : i64, tpu.core_type = #tpu.core_type<tc>, window_params = [{transform_indices = @transform_0, window_bounds = array<i64: 1, 4, 256>}, {pipeline_mode = #tpu.pipeline_mode<synchronous>, transform_indices = @transform_1, window_bounds = array<i64: 32, 4>}, {pipeline_mode = #tpu.pipeline_mode<synchronous>, transform_indices = @transform_2, window_bounds = array<i64: 32, 1>}, {transform_indices = @transform_3, window_bounds = array<i64: 1, 2, 256>}, {pipeline_mode = #tpu.pipeline_mode<synchronous>, transform_indices = @transform_4, window_bounds = array<i64: 16, 1>}, {pipeline_mode = #tpu.pipeline_mode<synchronous>, transform_indices = @transform_5, window_bounds = array<i64: 16, 1>}, {transform_indices = @transform_6, window_bounds = array<i64: 1, 32, 256>}, {transform_indices = @transform_7, window_bounds = array<i64: 1, 32, 256>}]} {
    %c0 = arith.constant 0 : index
    %c0_0 = arith.constant 0 : index
    %0 = vector.load %arg3[%c0, %c0_0] : memref<32x4xf32, #tpu.memory_space<vmem>>, vector<32x4xf32>
    %c0_1 = arith.constant 0 : index
    %c0_2 = arith.constant 0 : index
    %c0_3 = arith.constant 0 : index
    %1 = vector.load %arg2[%c0_1, %c0_2, %c0_3] : memref<1x4x256xf32, #tpu.memory_space<vmem>>, vector<1x4x256xf32>
    %2 = vector.shape_cast %1 : vector<1x4x256xf32> to vector<4x256xf32>
    %c0_4 = arith.constant 0 : index
    %c0_5 = arith.constant 0 : index
    %3 = vector.load %arg4[%c0_4, %c0_5] : memref<32x1xf32, #tpu.memory_space<vmem>>, vector<32x1xf32>
    %4 = vector.extract_strided_slice %0 {offsets = [0, 0], sizes = [32, 1], strides = [1, 1]} : vector<32x4xf32> to vector<32x1xf32>
    %5 = vector.extract_strided_slice %2 {offsets = [0, 0], sizes = [1, 256], strides = [1, 1]} : vector<4x256xf32> to vector<1x256xf32>
    %6 = vector.broadcast %4 : vector<32x1xf32> to vector<32x256xf32>
    %7 = vector.broadcast %5 : vector<1x256xf32> to vector<32x256xf32>
    %8 = arith.mulf %6, %7 : vector<32x256xf32>
    %9 = vector.broadcast %3 : vector<32x1xf32> to vector<32x256xf32>
    %10 = arith.addf %9, %8 : vector<32x256xf32>
    %11 = vector.extract_strided_slice %0 {offsets = [0, 1], sizes = [32, 1], strides = [1, 1]} : vector<32x4xf32> to vector<32x1xf32>
    %12 = vector.extract_strided_slice %2 {offsets = [1, 0], sizes = [1, 256], strides = [1, 1]} : vector<4x256xf32> to vector<1x256xf32>
    %13 = vector.broadcast %11 : vector<32x1xf32> to vector<32x256xf32>
    %14 = vector.broadcast %12 : vector<1x256xf32> to vector<32x256xf32>
    %15 = arith.mulf %13, %14 : vector<32x256xf32>
    %16 = arith.addf %10, %15 : vector<32x256xf32>
    %17 = vector.extract_strided_slice %0 {offsets = [0, 2], sizes = [32, 1], strides = [1, 1]} : vector<32x4xf32> to vector<32x1xf32>
    %18 = vector.extract_strided_slice %2 {offsets = [2, 0], sizes = [1, 256], strides = [1, 1]} : vector<4x256xf32> to vector<1x256xf32>
    %19 = vector.broadcast %17 : vector<32x1xf32> to vector<32x256xf32>
    %20 = vector.broadcast %18 : vector<1x256xf32> to vector<32x256xf32>
    %21 = arith.mulf %19, %20 : vector<32x256xf32>
    %22 = arith.addf %16, %21 : vector<32x256xf32>
    %23 = vector.extract_strided_slice %0 {offsets = [0, 3], sizes = [32, 1], strides = [1, 1]} : vector<32x4xf32> to vector<32x1xf32>
    %24 = vector.extract_strided_slice %2 {offsets = [3, 0], sizes = [1, 256], strides = [1, 1]} : vector<4x256xf32> to vector<1x256xf32>
    %25 = vector.broadcast %23 : vector<32x1xf32> to vector<32x256xf32>
    %26 = vector.broadcast %24 : vector<1x256xf32> to vector<32x256xf32>
    %27 = arith.mulf %25, %26 : vector<32x256xf32>
    %28 = arith.addf %22, %27 : vector<32x256xf32>
    %c0_6 = arith.constant 0 : index
    %c0_7 = arith.constant 0 : index
    %c0_8 = arith.constant 0 : index
    %29 = vector.load %arg8[%c0_6, %c0_7, %c0_8] : memref<1x32x256xf32, #tpu.memory_space<vmem>>, vector<1x32x256xf32>
    %30 = vector.shape_cast %29 : vector<1x32x256xf32> to vector<32x256xf32>
    %31 = vector.shape_cast %28 : vector<32x256xf32> to vector<1x32x256xf32>
    tpu.vector_store %arg8[%c0_6, %c0_7, %c0_8], %31 {strides = array<i32>} : memref<1x32x256xf32, #tpu.memory_space<vmem>>, vector<1x32x256xf32>,
    %c0_9 = arith.constant 0 : index
    %c0_10 = arith.constant 0 : index
    %32 = vector.load %arg6[%c0_9, %c0_10] : memref<16x1xf32, #tpu.memory_space<vmem>>, vector<16x1xf32>
    %c0_11 = arith.constant 0 : index
    %c0_12 = arith.constant 0 : index
    %33 = vector.load %arg7[%c0_11, %c0_12] : memref<16x1xf32, #tpu.memory_space<vmem>>, vector<16x1xf32>
    %c0_13 = arith.constant 0 : index
    %c0_14 = arith.constant 0 : index
    %c0_15 = arith.constant 0 : index
    %34 = vector.load %arg5[%c0_13, %c0_14, %c0_15] : memref<1x2x256xf32, #tpu.memory_space<vmem>>, vector<1x1x256xf32>
    %35 = vector.shape_cast %34 : vector<1x1x256xf32> to vector<1x256xf32>
    %c0_16 = arith.constant 0 : index
    %c1 = arith.constant 1 : index
    %c0_17 = arith.constant 0 : index
    %36 = vector.load %arg5[%c0_16, %c1, %c0_17] : memref<1x2x256xf32, #tpu.memory_space<vmem>>, vector<1x1x256xf32>
    %37 = vector.shape_cast %36 : vector<1x1x256xf32> to vector<1x256xf32>
    %38 = vector.broadcast %35 : vector<1x256xf32> to vector<16x256xf32>
    %39 = vector.broadcast %32 : vector<16x1xf32> to vector<16x256xf32>
    %40 = arith.mulf %38, %39 : vector<16x256xf32>
    %41 = vector.broadcast %33 : vector<16x1xf32> to vector<16x256xf32>
    %42 = arith.addf %40, %41 : vector<16x256xf32>
    %43 = math.sin %42 : vector<16x256xf32>
    %c0_18 = arith.constant 0 : index
    %c0_19 = arith.constant 0 : index
    %c0_20 = arith.constant 0 : index
    %44 = vector.load %arg9[%c0_18, %c0_19, %c0_20] : memref<1x32x256xf32, #tpu.memory_space<vmem>>, vector<1x16x256xf32>
    %45 = vector.shape_cast %44 : vector<1x16x256xf32> to vector<16x256xf32>
    %46 = vector.shape_cast %43 : vector<16x256xf32> to vector<1x16x256xf32>
    tpu.vector_store %arg9[%c0_18, %c0_19, %c0_20], %46 {strides = array<i32>} : memref<1x32x256xf32, #tpu.memory_space<vmem>>, vector<1x16x256xf32>,
    %47 = vector.broadcast %37 : vector<1x256xf32> to vector<16x256xf32>
    %48 = vector.broadcast %32 : vector<16x1xf32> to vector<16x256xf32>
    %49 = arith.mulf %47, %48 : vector<16x256xf32>
    %50 = vector.broadcast %33 : vector<16x1xf32> to vector<16x256xf32>
    %51 = arith.addf %49, %50 : vector<16x256xf32>
    %52 = math.sin %51 : vector<16x256xf32>
    %c0_21 = arith.constant 0 : index
    %c16 = arith.constant 16 : index
    %c0_22 = arith.constant 0 : index
    %53 = vector.load %arg9[%c0_21, %c16, %c0_22] : memref<1x32x256xf32, #tpu.memory_space<vmem>>, vector<1x16x256xf32>
    %54 = vector.shape_cast %53 : vector<1x16x256xf32> to vector<16x256xf32>
    %55 = vector.shape_cast %52 : vector<16x256xf32> to vector<1x16x256xf32>
    tpu.vector_store %arg9[%c0_21, %c16, %c0_22], %55 {strides = array<i32>} : memref<1x32x256xf32, #tpu.memory_space<vmem>>, vector<1x16x256xf32>,
    return
  }
  func.func @transform_0(%arg0: i32, %arg1: i32) -> (i32, i32, i32) {
    %c0_i32 = arith.constant 0 : i32
    %c0_i32_0 = arith.constant 0 : i32
    return %arg0, %c0_i32, %arg1 : i32, i32, i32
  }
  func.func @transform_1(%arg0: i32, %arg1: i32) -> (i32, i32) {
    %c0_i32 = arith.constant 0 : i32
    %c0_i32_0 = arith.constant 0 : i32
    %c0_i32_1 = arith.constant 0 : i32
    return %c0_i32, %c0_i32_0 : i32, i32
  }
  func.func @transform_2(%arg0: i32, %arg1: i32) -> (i32, i32) {
    %c0_i32 = arith.constant 0 : i32
    %c0_i32_0 = arith.constant 0 : i32
    %c0_i32_1 = arith.constant 0 : i32
    return %c0_i32, %c0_i32_0 : i32, i32
  }
  func.func @transform_3(%arg0: i32, %arg1: i32) -> (i32, i32, i32) {
    %c0_i32 = arith.constant 0 : i32
    %c0_i32_0 = arith.constant 0 : i32
    return %arg0, %c0_i32, %arg1 : i32, i32, i32
  }
  func.func @transform_4(%arg0: i32, %arg1: i32) -> (i32, i32) {
    %c0_i32 = arith.constant 0 : i32
    %c0_i32_0 = arith.constant 0 : i32
    %c0_i32_1 = arith.constant 0 : i32
    return %c0_i32, %c0_i32_0 : i32, i32
  }
  func.func @transform_5(%arg0: i32, %arg1: i32) -> (i32, i32) {
    %c0_i32 = arith.constant 0 : i32
    %c0_i32_0 = arith.constant 0 : i32
    %c0_i32_1 = arith.constant 0 : i32
    return %c0_i32, %c0_i32_0 : i32, i32
  }
  func.func @transform_6(%arg0: i32, %arg1: i32) -> (i32, i32, i32) {
    %c0_i32 = arith.constant 0 : i32
    %c0_i32_0 = arith.constant 0 : i32
    return %arg0, %c0_i32, %arg1 : i32, i32, i32
  }
  func.func @transform_7(%arg0: i32, %arg1: i32) -> (i32, i32, i32) {
    %c0_i32 = arith.constant 0 : i32
    %c0_i32_0 = arith.constant 0 : i32
    return %arg0, %c0_i32, %arg1 : i32, i32, i32
  }
}

</mosaic_0001>

<bundles_post_ra>
// kernel: stage_joiner_forward.1
= control target key start
LH: loop header
LB: loop body
LE: loop exit
PB: predicated region body
PF: predicated region fallthrough
CT: control target
= control target key end

     0   :  { %s2194_s24 = smov 0   ;;  %s2196_s25 = smov 0   ;;  %s3472_s0 = inlined_call_operand.vmem [shape: f32[2,4,256], index: 0, kind: input, shape index: {}]   ;;  %s3473_s1 = inlined_call_operand.vmem [shape: f32[32,4], index: 1, kind: input, shape index: {}]   ;;  %s3474_s2 = inlined_call_operand.vmem [shape: f32[32,1], index: 2, kind: input, shape index: {}]   ;;  %s3475_s3 = inlined_call_operand.vmem [shape: f32[2,2,256], index: 3, kind: input, shape index: {}]   ;;  %s3476_s4 = inlined_call_operand.vmem [shape: f32[16,1], index: 4, kind: input, shape index: {}]   ;;  %s3477_s5 = inlined_call_operand.vmem [shape: f32[16,1], index: 5, kind: input, shape index: {}]   ;;  %s3478_s6 = inlined_call_operand.vmem [shape: f32[2,32,256], index: 6, kind: output, shape index: {0}]   ;;  %s3479_s7 = inlined_call_operand.vmem [shape: f32[2,32,256], index: 7, kind: output, shape index: {1}]  }
   0x1   :  { %s2198_s26 = smov 0  }
   0x2 LB: > { %s30_s27 = sadd.s32 1, %s2138_s25  ;;  %p2032_p0 = scmp.ge.s32.totalorder %s2142_s26, 1  ;;  %s2142_s26 = sphi %s2198_s26, %s18_s26   ;;  %s2138_s25 = sphi %s2196_s25, %s3512_s25   ;;  %s2134_s24 = sphi %s2194_s24, %s3511_s24  }
   0x3   : > { %p32_p1 = scmp.ge.s32.totalorder %s30_s27, 2  ;;  %p280_p2 = scmp.lt.s32.totalorder %s2142_s26, 3 }
   0x5   : > { %s3514_s27 = smov (%p32_p1, %s30_s27), 0  ;;  %p281_p3 = pnand %p2032_p0, %p280_p2 }
   0x6   : > { %p339_p4 = scmp.lt.s32.totalorder (!%p281_p3), %s2134_s24, 1 }
   0x7   : > { %284 = sbr.rel (%p281_p3) target bundleno = 484 (0x1e4), region = 44 }
   0xc   : > { %v574_v0 = vld [vmem:[%s3477_s5] sm:$0xff]  ;;  %v2144_v2 = vmov 0   ;;  %v575_v4 = vld [vmem:[%s3477_s5 + $0x8] sm:$0xff]  ;;  %v381_v7 = vld [vmem:[%s3473_s1 + $0x18] sm:$0xff]  ;;  %v2145_v13 = vmov 1   ;;  %v2146_v14 = vmov 2  }
   0xd   : > { %v572_v1 = vld [vmem:[%s3476_s4] sm:$0xff]  ;;  %2107 = vset.pattern.permute.xlu1 %v2144_v2  ;;  %2106 = vset.pattern.permute.xlu0 %v2144_v2  ;;  %v573_v5 = vld [vmem:[%s3476_s4 + $0x8] sm:$0xff]  ;;  %v380_v8 = vld [vmem:[%s3473_s1 + $0x10] sm:$0xff]  ;;  %v2147_v15 = vmov 3   ;;  %s3516_s24 = smov (!%p339_p4, %s2134_s24), 1 }
   0xe   : > { %v378_v3 = vld [vmem:[%s3473_s1] sm:$0xff]  ;;  %600 = vperm.xlu1 %2107, %v574_v0   ;;  %586 = vperm.xlu0 %2106, %v572_v1   ;;  %v379_v6 = vld [vmem:[%s3473_s1 + $0x8] sm:$0xff]  ;;  %v385_v10 = vld [vmem:[%s3474_s2 + $0x10] sm:$0xff]  ;;  %s2069_s10 = sshll.u32 %s3516_s24, 2  ;;  %v3486_v56 = vmov 683565275  }
   0xf   : > { %2108 = vset.pattern.permute.xlu2 %v2144_v2  ;;  %v383_v9 = vld [vmem:[%s3474_s2] sm:$0xff]  ;;  %v384_v11 = vld [vmem:[%s3474_s2 + $0x8] sm:$0xff]  ;;  %v386_v12 = vld [vmem:[%s3474_s2 + $0x18] sm:$0xff]  ;;  %s356_s13 = scalar_lea.vmem %s3475_s3, %s2069_s10  ;;  %v3488_v58 = vmov 2475754826   ;;  %s2068_s14 = sshll.u32 %s3516_s24, 3 }
  0x10   : > { %389 = vperm.xlu2 %2108, %v378_v3   ;;  %v2262_v16 = vld [vmem:[%s356_s13] ss:$2 sm:$0x3]  ;;  %v2264_v17 = vld [vmem:[%s356_s13 + $0x1] ss:$2 sm:$0x3]  ;;  %s2581_s17 = scalar_lea.vmem %s3472_s0, %s2068_s14 }
  0x11   : > { %v580_v18 = vperm.slane %v2262_v16, 0  ;;  %v581_v19 = vperm.slane %v2262_v16, 1  ;;  %v3481_v20 = vperm.slane %v2264_v17, 0  ;;  %v2150_v62 = vmov 2131351028   ;;  %s2070_s18 = sshll.u32 %s3516_s24, 6 }
  0x12   : > { %v2151_v1 = vmov 2102212464   ;;  %s3124_s21 = scalar_lea.vmem %s3479_s7, %s2070_s18  ;;  %s3423_s28 = scalar_lea.vmem %s3478_s6, %s2070_s18 }
  0x16   : > { %605 = vperm.xlu1 %2107, %v575_v4   ;;  %591 = vperm.xlu0 %2106, %v573_v5   ;;  %v2152_v5 = vmov 920167782  }
  0x18   : > { %394 = vperm.xlu2 %2108, %v379_v6  }
  0x1e   : > { %404 = vperm.xlu1 %2107, %v381_v7   ;;  %399 = vperm.xlu0 %2106, %v380_v8  }
  0x20   : > { %424 = vperm.xlu2 %2108, %v383_v9  }
  0x26   : > { %434 = vperm.xlu1 %2107, %v385_v10   ;;  %429 = vperm.xlu0 %2106, %v384_v11  }
  0x28   : > { %439 = vperm.xlu2 %2108, %v386_v12  }
  0x2e   : > { %2110 = vset.pattern.permute.xlu1 %v2145_v13  ;;  %2109 = vset.pattern.permute.xlu0 %v2145_v13 }
  0x2f   : > { %455 = vperm.xlu1 %2110, %v379_v6   ;;  %451 = vperm.xlu0 %2109, %v378_v3  }
  0x30   : > { %2111 = vset.pattern.permute.xlu2 %v2145_v13 }
  0x31   : > { %459 = vperm.xlu2 %2111, %v380_v8  }
  0x37   : > { %463 = vperm.xlu1 %2110, %v381_v7   ;;  %2113 = vset.pattern.permute.xlu0 %v2146_v14 }
  0x38   : > { %493 = vperm.xlu0 %2113, %v379_v6  }
  0x39   : > { %2112 = vset.pattern.permute.xlu2 %v2146_v14 }
  0x3a   : > { %489 = vperm.xlu2 %2112, %v378_v3  }
  0x3f   : > { %2114 = vset.pattern.permute.xlu1 %v2146_v14 }
  0x40   : > { %497 = vperm.xlu1 %2114, %v380_v8   ;;  %2117 = vset.pattern.permute.xlu0 %v2147_v15 }
  0x41   : > { %535 = vperm.xlu0 %2117, %v380_v8   ;;  %v3483_v8 = vmov 1326507024  }
  0x42   : > { %501 = vperm.xlu2 %2112, %v381_v7  }
  0x48   : > { %2115 = vset.pattern.permute.xlu1 %v2147_v15 }
  0x49   : > { %527 = vperm.xlu1 %2115, %v378_v3   ;;  %2118 = vset.pattern.permute.xlu0 %v2144_v2 }
  0x4a   : > { %2116 = vset.pattern.permute.xlu2 %v2147_v15 }
  0x4b   : > { %531 = vperm.xlu2 %2116, %v379_v6  }
  0x51   : > { %539 = vperm.xlu1 %2115, %v381_v7  }
  0x80   : > { %v2269_v21 = vpop.permute.xlu0 %586  ;;  %v2280_v25 = vpop.permute.xlu1 %600 }
  0x81   : > { %v594_v22 = vmul.f32 %v2269_v21, %v580_v18  ;;  %v595_v23 = vmul.f32 %v2269_v21, %v581_v19  ;;  %v1241_v24 = vmul.f32 %v3481_v20, %v2269_v21 }
  0x83   : > { %v2283_v26 = vadd.f32 %v2280_v25, %v594_v22  ;;  %v2286_v27 = vadd.f32 %v2280_v25, %v595_v23  ;;  %v2289_v28 = vadd.f32 %v1241_v24, %v2280_v25 }
  0x85   : > { %v612_v29 = vand.u32 2147483647, %v2283_v26  ;;  %v615_v30 = vand.u32 2139095040, %v2283_v26  ;;  %v767_v31 = vand.u32 2147483647, %v2286_v27  ;;  %v770_v32 = vand.u32 2139095040, %v2286_v27 }
  0x86   : > { %v1252_v37 = vand.u32 2139095040, %v2289_v28 }
  0x87   : > { %v616_v33 = vshrl.u32 %v615_v30, 23  ;;  %v619_v34 = vand.u32 8388607, %v612_v29  ;;  %v771_v35 = vshrl.u32 %v770_v32, 23  ;;  %v774_v36 = vand.u32 8388607, %v767_v31 }
  0x88   : > { %v1253_v44 = vshrl.u32 %v1252_v37, 23 }
  0x89   : > { %v2042_v38 = vadd.s32 4294967169, %v616_v33  ;;  %v620_v39 = vor.u32 8388608, %v619_v34  ;;  %v2045_v40 = vadd.s32 4294967169, %v771_v35  ;;  %v775_v41 = vor.u32 8388608, %v774_v36 }
  0x8a   : > { %v2304_v50 = vadd.s32 4294967169, %v1253_v44 }
  0x8b   : > { %v622_v42 = vadd.s32 1, %v2042_v38  ;;  %v777_v43 = vadd.s32 1, %v2045_v40  ;;  %v2300_v45 = vshll.u32 %v620_v39, 8  ;;  %v2302_v47 = vshll.u32 %v775_v41, 8 }
  0x8d   : > { %vm623_vm0 = vcmp.gt.s32.totalorder %v622_v42, 0  ;;  %vm778_vm1 = vcmp.gt.s32.totalorder %v777_v43, 0  ;;  %v2307_v52 = vand.u32 65535, %v2300_v45  ;;  %v2310_v53 = vshrl.u32 %v2300_v45, 16 }
  0x8e   : > { %v624_v46 = vsel %vm623_vm0, %v622_v42, 0  ;;  %v779_v49 = vsel %vm778_vm1, %v777_v43, 0  ;;  %v2319_v60 = vand.u32 65535, %v2302_v47 }
  0x8f   : > { %v626_v48 = vand.u32 31, %v624_v46  ;;  %v2312_v54 = vand.u32 31, %v779_v49  ;;  %v2314_v55 = vshrl.u32 %v624_v46, 5 }
  0x91   : > { %v627_v51 = vsub.s32 32, %v626_v48  ;;  %v629_v57 = vshll.u32 %v3486_v56, %v626_v48  ;;  %v632_v59 = vshll.u32 %v3488_v58, %v626_v48  ;;  %v635_v0 = vshll.u32 %v2150_v62, %v626_v48 }
  0x92   : > { %v638_v4 = vshll.u32 %v2151_v1, %v626_v48  ;;  %v641_v7 = vshll.u32 %v2152_v5, %v626_v48  ;;  %v2330_v13 = vsub.s32 32, %v2312_v54  ;;  %vm644_vm2 = vcmp.lt.s32.totalorder %v2314_v55, 1 }
  0x93   : > { %v630_v61 = vshrl.u32 %v3488_v58, %v627_v51  ;;  %v633_v63 = vshrl.u32 %v2150_v62, %v627_v51  ;;  %v636_v3 = vshrl.u32 %v2151_v1, %v627_v51  ;;  %v639_v6 = vshrl.u32 %v2152_v5, %v627_v51 }
  0x94   : > { %v642_v9 = vshrl.u32 %v3483_v8, %v627_v51  ;;  %vm645_vm3 = vcmp.lt.s32.totalorder %v2314_v55, 2  ;;  %v628_v22 = vshrl.u32 %v3486_v56, %v627_v51  ;;  %vm647_vm4 = vcmp.lt.s32.totalorder %v2314_v55, 4 }
  0x95   : > { %v631_v10 = vor.u32 %v630_v61, %v629_v57  ;;  %v634_v11 = vor.u32 %v633_v63, %v632_v59  ;;  %v637_v12 = vor.u32 %v636_v3, %v635_v0  ;;  %v640_v14 = vor.u32 %v639_v6, %v638_v4 }
  0x96   : > { %v643_v15 = vor.u32 %v642_v9, %v641_v7  ;;  %vm646_vm5 = vcmp.lt.s32.totalorder %v2314_v55, 3  ;;  %v784_v33 = vshll.u32 %v3486_v56, %v2312_v54  ;;  %v785_v37 = vshrl.u32 %v3488_v58, %v2330_v13 }
  0x97   : > { %v652_v23 = vsel %vm644_vm2, %v631_v10, %v634_v11  ;;  %v656_v24 = vsel %vm644_vm2, %v634_v11, %v637_v12  ;;  %v653_v30 = vsel %vm647_vm4, %v640_v14, 920167782  ;;  %v649_v34 = vsel %vm647_vm4, %v637_v12, 2102212464 }
  0x98   : > { %v657_v32 = vsel %vm647_vm4, %v643_v15, 1326507024  ;;  %v654_v35 = vsel %vm646_vm5, %v637_v12, %v653_v30  ;;  %v787_v40 = vshll.u32 %v3488_v58, %v2312_v54  ;;  %v788_v41 = vshrl.u32 %v2150_v62, %v2330_v13 }
  0x99   : > { %v658_v36 = vsel %vm646_vm5, %v640_v14, %v657_v32  ;;  %v655_v38 = vsel %vm645_vm3, %v652_v23, %v654_v35  ;;  %v648_v48 = vsel %vm644_vm2, %v628_v22, %v631_v10  ;;  %v650_v51 = vsel %vm646_vm5, %v634_v11, %v649_v34 }
  0x9a   : > { %v659_v39 = vsel %vm645_vm3, %v656_v24, %v658_v36  ;;  %v685_v44 = vand.u32 65535, %v655_v38  ;;  %v686_v46 = vshrl.u32 %v655_v38, 16  ;;  %v2361_v57 = vshrl.u32 %v779_v49, 5 }
  0x9b   : > { %v663_v42 = vand.u32 65535, %v659_v39  ;;  %v664_v43 = vshrl.u32 %v659_v39, 16  ;;  %v2363_v59 = vor.u32 %v785_v37, %v784_v33  ;;  %v2367_v0 = vor.u32 %v788_v41, %v787_v40 }
  0x9c   : > { %v791_v3 = vshrl.u32 %v2151_v1, %v2330_v13  ;;  %v688_v6 = vmul.u32 %v686_v46, %v2307_v52  ;;  %v689_v7 = vmul.u32 %v685_v44, %v2310_v53  ;;  %v790_v49 = vshll.u32 %v2150_v62, %v2312_v54 }
  0x9d   : > { %v666_v61 = vmul.u32 %v664_v43, %v2307_v52  ;;  %v667_v63 = vmul.u32 %v663_v42, %v2310_v53  ;;  %v665_v4 = vmul.u32 %v663_v42, %v2307_v52  ;;  %v668_v9 = vmul.u32 %v664_v43, %v2310_v53 }
  0x9e   : > { %v687_v11 = vmul.u32 %v685_v44, %v2307_v52  ;;  %v690_v12 = vmul.u32 %v686_v46, %v2310_v53  ;;  %v691_v23 = vshll.u32 %v688_v6, 16  ;;  %v693_v30 = vshll.u32 %v689_v7, 16 }
  0x9f   : > { %v669_v10 = vshll.u32 %v666_v61, 16  ;;  %v670_v14 = vshrl.u32 %v666_v61, 16  ;;  %v671_v15 = vshll.u32 %v667_v63, 16  ;;  %v672_v22 = vshrl.u32 %v667_v63, 16 }
  0xa0   : > { %v2379_v32 = vor.u32 %v791_v3, %v790_v49  ;;  %vm695_vm7 = vc.u32 %v687_v11, %v691_v23  ;;  %v697_v34 = vadd.s32 %v691_v23, %v687_v11  ;;  %v794_v35 = vshrl.u32 %v2152_v5, %v2330_v13 }
  0xa1   : > { %vm673_vm6 = vc.u32 %v665_v4, %v669_v10  ;;  %v675_v24 = vadd.s32 %v669_v10, %v665_v4  ;;  %v696_v52 = vsel %vm695_vm7, 1, %v2144_v2  ;;  %v793_v53 = vshll.u32 %v2151_v1, %v2312_v54 }
  0xa2   : > { %v674_v33 = vsel %vm673_vm6, 1, %v2144_v2  ;;  %v698_v38 = vadd.s32 %v696_v52, %v690_v12  ;;  %vm699_vm9 = vc.u32 %v697_v34, %v693_v30  ;;  %v796_v39 = vshll.u32 %v2152_v5, %v2312_v54 }
  0xa3   : > { %v676_v36 = vadd.s32 %v674_v33, %v668_v9  ;;  %vm677_vm8 = vc.u32 %v675_v24, %v671_v15  ;;  %v700_v41 = vsel %vm699_vm9, 1, %v2144_v2  ;;  %v795_v42 = vor.u32 %v794_v35, %v793_v53 }
  0xa4   : > { %v678_v37 = vsel %vm677_vm8, 1, %v2144_v2  ;;  %v797_v43 = vshrl.u32 %v3483_v8, %v2330_v13  ;;  %v692_v44 = vshrl.u32 %v688_v6, 16  ;;  %v694_v46 = vshrl.u32 %v689_v7, 16 }
  0xa5   : > { %v680_v40 = vadd.s32 %v678_v37, %v676_v36  ;;  %v2393_v61 = vadd.s32 %v697_v34, %v693_v30  ;;  %v702_v63 = vadd.s32 %v700_v41, %v698_v38  ;;  %vm799_vm10 = vcmp.lt.s32.totalorder %v2361_v57, 1 }
  0xa6   : > { %v798_v4 = vor.u32 %v797_v43, %v796_v39  ;;  %vm802_vm11 = vcmp.lt.s32.totalorder %v2361_v57, 4  ;;  %vm801_vm12 = vcmp.lt.s32.totalorder %v2361_v57, 3  ;;  %v807_v54 = vsel %vm799_vm10, %v2363_v59, %v2367_v0 }
  0xa7   : > { %v681_v3 = vadd.s32 %v680_v40, %v670_v14  ;;  %v703_v49 = vadd.s32 %v702_v63, %v692_v44  ;;  %v808_v6 = vsel %vm802_vm11, %v795_v42, 920167782  ;;  %vm800_vm13 = vcmp.lt.s32.totalorder %v2361_v57, 2 }
  0xa8   : > { %v809_v9 = vsel %vm801_vm12, %v2379_v32, %v808_v6  ;;  %v811_v10 = vsel %vm799_vm10, %v2367_v0, %v2379_v32  ;;  %v651_v11 = vsel %vm645_vm3, %v648_v48, %v650_v51  ;;  %v812_v15 = vsel %vm802_vm11, %v798_v4, 1326507024 }
  0xa9   : > { %v2404_v7 = vadd.s32 %v681_v3, %v672_v22  ;;  %v704_v12 = vadd.s32 %v703_v49, %v694_v46  ;;  %v810_v14 = vsel %vm800_vm13, %v807_v54, %v809_v9  ;;  %v813_v22 = vsel %vm801_vm12, %v795_v42, %v812_v15 }
  0xaa   : > { %v817_v23 = vshrl.u32 %v2302_v47, 16  ;;  %v840_v24 = vand.u32 65535, %v810_v14  ;;  %v814_v55 = vsel %vm800_vm13, %v811_v10, %v813_v22  ;;  %v841_v48 = vshrl.u32 %v810_v14, 16 }
  0xab   : > { %vm707_vm14 = vc.u32 %v2404_v7, %v2393_v61  ;;  %v708_v30 = vadd.s32 1, %v704_v12  ;;  %v1259_v51 = vadd.s32 1, %v2304_v50  ;;  %v705_v33 = vmul.u32 %v2300_v45, %v651_v11 }
  0xac   : > { %v818_v34 = vand.u32 65535, %v814_v55  ;;  %v819_v35 = vshrl.u32 %v814_v55, 16  ;;  %v843_v52 = vmul.u32 %v841_v48, %v2319_v60  ;;  %v844_v53 = vmul.u32 %v840_v24, %v817_v23 }
  0xad   : > { %v709_v36 = vsel %vm707_vm14, %v708_v30, %v704_v12  ;;  %v1249_v40 = vand.u32 2147483647, %v2289_v28  ;;  %v842_v41 = vmul.u32 %v840_v24, %v2319_v60  ;;  %v845_v42 = vmul.u32 %v841_v48, %v817_v23 }
  0xae   : > { %v710_v37 = vadd.s32 %v709_v36, %v705_v33  ;;  %v821_v38 = vmul.u32 %v819_v35, %v2319_v60  ;;  %v822_v39 = vmul.u32 %v818_v34, %v817_v23  ;;  %v846_v43 = vshll.u32 %v843_v52, 16 }
  0xaf   : > { %vm1260_vm15 = vcmp.gt.s32.totalorder %v1259_v51, 0  ;;  %v820_v45 = vmul.u32 %v818_v34, %v2319_v60  ;;  %v823_v44 = vmul.u32 %v819_v35, %v817_v23  ;;  %v848_v3 = vshll.u32 %v844_v53, 16 }
  0xb0   : > { %v711_v50 = vadd.s32 536870912, %v710_v37  ;;  %v824_v46 = vshll.u32 %v821_v38, 16  ;;  %v826_v63 = vshll.u32 %v822_v39, 16  ;;  %vm850_vm0 = vc.u32 %v842_v41, %v846_v43 }
  0xb1   : > { %v852_v4 = vadd.s32 %v846_v43, %v842_v41  ;;  %v851_v6 = vsel %vm850_vm0, 1, %v2144_v2  ;;  %v2440_v11 = vand.u32 8388607, %v1249_v40  ;;  %v804_v12 = vsel %vm802_vm11, %v2379_v32, 2102212464 }
  0xb2   : > { %v2434_v49 = vshrl.u32 %v711_v50, 30  ;;  %vm828_vm1 = vc.u32 %v820_v45, %v824_v46  ;;  %v830_v54 = vadd.s32 %v824_v46, %v820_v45  ;;  %v853_v10 = vadd.s32 %v851_v6, %v845_v42 }
  0xb3   : > { %v829_v9 = vsel %vm828_vm1, 1, %v2144_v2  ;;  %vm854_vm2 = vc.u32 %v852_v4, %v848_v3  ;;  %v783_v15 = vshrl.u32 %v3486_v56, %v2330_v13  ;;  %v1261_v24 = vsel %vm1260_vm15, %v1259_v51, 0 }
  0xb4   : > { %v713_v60 = vshll.u32 %v2434_v49, 30  ;;  %v831_v14 = vadd.s32 %v829_v9, %v823_v44  ;;  %vm832_vm3 = vc.u32 %v830_v54, %v826_v63  ;;  %v855_v23 = vsel %vm854_vm2, 1, %v2144_v2 }
  0xb5   : > { %v833_v22 = vsel %vm832_vm3, 1, %v2144_v2  ;;  %v825_v55 = vshrl.u32 %v821_v38, 16  ;;  %v857_v33 = vadd.s32 %v855_v23, %v853_v10  ;;  %v803_v34 = vsel %vm799_vm10, %v783_v15, %v2363_v59 }
  0xb6   : > { %v714_v30 = vsub.s32 %v710_v37, %v713_v60  ;;  %v835_v48 = vadd.s32 %v833_v22, %v831_v14  ;;  %v805_v32 = vsel %vm801_vm12, %v2367_v0, %v804_v12  ;;  %v847_v35 = vshrl.u32 %v843_v52, 16 }
  0xb7   : > { %v1263_v13 = vand.u32 31, %v1261_v24  ;;  %v827_v41 = vshrl.u32 %v822_v39, 16  ;;  %v849_v43 = vshrl.u32 %v844_v53, 16  ;;  %v806_v38 = vsel %vm800_vm13, %v803_v34, %v805_v32 }
  0xb8   : > { %vm715_vm4 = vcmp.lt.s32.totalorder %v714_v30, 0  ;;  %v716_v36 = vsub.s32 0, %v714_v30  ;;  %v836_v42 = vadd.s32 %v835_v48, %v825_v55  ;;  %v858_v51 = vadd.s32 %v857_v33, %v847_v35 }
  0xb9   : > { %v2461_v45 = vsub.s32 32, %v1263_v13  ;;  %v2463_v44 = vadd.s32 %v852_v4, %v848_v3  ;;  %v706_v52 = vadd.s32 %v2393_v61, %v2404_v7  ;;  %v1257_v39 = vor.u32 8388608, %v2440_v11 }
  0xba   : > { %v717_v37 = vsel %vm715_vm4, %v716_v36, %v714_v30  ;;  %v2459_v50 = vadd.s32 %v836_v42, %v827_v41  ;;  %v859_v0 = vadd.s32 %v858_v51, %v849_v43  ;;  %v860_v53 = vmul.u32 %v2302_v47, %v806_v38 }
  0xbb   : > { %v718_v59 = vclz %v717_v37  ;;  %v2471_v63 = vshrl.u32 %v1261_v24, 5  ;;  %v1269_v54 = vshll.u32 %v3488_v58, %v1263_v13  ;;  %v1270_v3 = vshrl.u32 %v2150_v62, %v2461_v45 }
  0xbc   : > { %vm862_vm5 = vc.u32 %v2459_v50, %v2463_v44  ;;  %v863_v57 = vadd.s32 1, %v859_v0  ;;  %v1276_v4 = vshrl.u32 %v2152_v5, %v2461_v45  ;;  %v1273_v7 = vshrl.u32 %v2151_v1, %v2461_v45 }
  0xbd   : > { %v2043_v46 = vadd.s32 4294967294, %v718_v59  ;;  %v1275_v47 = vshll.u32 %v2151_v1, %v1263_v13  ;;  %v1267_v10 = vshrl.u32 %v3488_v58, %v2461_v45  ;;  %v1279_v11 = vshrl.u32 %v3483_v8, %v2461_v45 }
  0xbe   : > { %v864_v61 = vsel %vm862_vm5, %v863_v57, %v859_v0  ;;  %v1272_v14 = vshll.u32 %v2150_v62, %v1263_v13  ;;  %v1266_v23 = vshll.u32 %v3486_v56, %v1263_v13  ;;  %v2487_v24 = vor.u32 %v1270_v3, %v1269_v54 }
  0xbf   : > { %vm2044_vm6 = vcmp.lt.s32.totalorder %v2043_v46, 0  ;;  %v865_v9 = vadd.s32 %v864_v61, %v860_v53  ;;  %v1277_v15 = vor.u32 %v1276_v4, %v1275_v47  ;;  %v1278_v55 = vshll.u32 %v2152_v5, %v1263_v13 }
  0xc0   : > { %v721_v6 = vsel %vm2044_vm6, 0, %v2043_v46  ;;  %v2490_v32 = vor.u32 %v1273_v7, %v1272_v14  ;;  %v2494_v36 = vor.u32 %v1267_v10, %v1266_v23  ;;  %vm1284_vm7 = vcmp.lt.s32.totalorder %v2471_v63, 4 }
  0xc1   : > { %v722_v60 = vsub.s32 32, %v721_v6  ;;  %v726_v12 = vsub.s32 4294967266, %v721_v6  ;;  %v866_v22 = vadd.s32 536870912, %v865_v9  ;;  %v723_v48 = vshll.u32 %v714_v30, %v721_v6 }
  0xc2   : > { %v1280_v41 = vor.u32 %v1279_v11, %v1278_v55  ;;  %v1290_v51 = vsel %vm1284_vm7, %v1277_v15, 920167782  ;;  %vm1281_vm8 = vcmp.lt.s32.totalorder %v2471_v63, 1  ;;  %v2501_v30 = vshll.u32 %v1257_v39, 8 }
  0xc3   : > { %v724_v33 = vshrl.u32 %v706_v52, %v722_v60  ;;  %v727_v34 = vadd.s32 127, %v726_v12  ;;  %v2492_v35 = vshrl.u32 %v866_v22, 30  ;;  %v3480_v38 = vperm.slane %v2264_v17, 1 }
  0xc4   : > { %vm1283_vm9 = vcmp.lt.s32.totalorder %v2471_v63, 3  ;;  %v1293_v59 = vsel %vm1281_vm8, %v2487_v24, %v2490_v32  ;;  %v1289_v52 = vsel %vm1281_vm8, %v2494_v36, %v2487_v24  ;;  %v1294_v46 = vsel %vm1284_vm7, %v1280_v41, 1326507024 }
  0xc5   : > { %v725_v42 = vor.u32 %v724_v33, %v723_v48  ;;  %v728_v43 = vshll.u32 %v727_v34, 23  ;;  %v868_v37 = vshll.u32 %v2492_v35, 30  ;;  %v1291_v39 = vsel %vm1283_vm9, %v2490_v32, %v1290_v51 }
  0xc6   : > { %vm1282_vm10 = vcmp.lt.s32.totalorder %v2471_v63, 2  ;;  %v1295_v54 = vsel %vm1283_vm9, %v1277_v15, %v1294_v46  ;;  %v1298_v61 = vand.u32 65535, %v2501_v30  ;;  %v1242_v11 = vmul.f32 %v3480_v38, %v2269_v21 }
  0xc7   : > { %v729_v13 = vor.u32 4788187, %v728_v43  ;;  %v2509_v0 = vsub.s32 %v865_v9, %v868_v37  ;;  %v732_v57 = vcvt.s32.f32 %v725_v42  ;;  %v1296_v4 = vsel %vm1282_vm10, %v1293_v59, %v1295_v54 }
  0xc8   : > { %v1292_v47 = vsel %vm1282_vm10, %v1289_v52, %v1291_v39  ;;  %v1300_v6 = vand.u32 65535, %v1296_v4  ;;  %v1301_v9 = vshrl.u32 %v1296_v4, 16  ;;  %v1299_v60 = vshrl.u32 %v2501_v30, 16 }
  0xc9   : > { %v730_v53 = vand.u32 2147483647, %v729_v13  ;;  %vm870_vm11 = vcmp.lt.s32.totalorder %v2509_v0, 0  ;;  %v871_v3 = vsub.s32 0, %v2509_v0  ;;  %vm614_vm12 = vcmp.lt.s32.totalorder %v2283_v26, 0 }
  0xca   : > { %v1303_v15 = vmul.u32 %v1301_v9, %v1298_v61  ;;  %vm2538_vm13 = vcmp.le.f32.partialorder %v612_v29, 0.7853982  ;;  %v2542_v23 = vmul.u32 %v1300_v6, %v1299_v60  ;;  %v1322_v55 = vand.u32 65535, %v1292_v47 }
  0xcb   : > { %v733_v7 = vmul.f32 %v732_v57, %v730_v53  ;;  %v872_v10 = vsel %vm870_vm11, %v871_v3, %v2509_v0  ;;  %v1323_v48 = vshrl.u32 %v1292_v47, 16  ;;  %v1302_v34 = vmul.u32 %v1300_v6, %v1298_v61 }
  0xcc   : > { %v873_v14 = vclz %v872_v10  ;;  %v1306_v41 = vshll.u32 %v1303_v15, 16  ;;  %v861_v29 = vadd.s32 %v2463_v44, %v2459_v50  ;;  %v2554_v43 = vadd.f32 %v1242_v11, %v2280_v25 }
  0xcd   : > { %v734_v12 = vxor.u32 2147483648, %v733_v7  ;;  %v1305_v51 = vmul.u32 %v1301_v9, %v1299_v60  ;;  %v1308_v52 = vshll.u32 %v2542_v23, 16  ;;  %v1325_v46 = vmul.u32 %v1323_v48, %v1298_v61 }
  0xce   : > { %v2046_v33 = vadd.s32 4294967294, %v873_v14  ;;  %vm1310_vm15 = vc.u32 %v1302_v34, %v1306_v41  ;;  %v1312_v13 = vadd.s32 %v1306_v41, %v1302_v34  ;;  %v1326_v44 = vmul.u32 %v1322_v55, %v1299_v60 }
  0xcf   : > { %v735_v21 = vsel %vm614_vm12, %v734_v12, %v733_v7  ;;  %v1311_v39 = vsel %vm1310_vm15, 1, %v2144_v2  ;;  %v1328_v3 = vshll.u32 %v1325_v46, 16  ;;  %v1324_v6 = vmul.u32 %v1322_v55, %v1298_v61 }
  0xd0   : > { %v2549_v42 = vsel %vm2538_vm13, %v2283_v26, %v735_v21  ;;  %vm2047_vm14 = vcmp.lt.s32.totalorder %v2046_v33, 0  ;;  %v1313_v54 = vadd.s32 %v1311_v39, %v1305_v51  ;;  %vm1314_vm0 = vc.u32 %v1312_v13, %v1308_v52 }
  0xd1   : > { %v2558_v37 = vmul.f32 %v2549_v42, %v2549_v42  ;;  %v876_v59 = vsel %vm2047_vm14, 0, %v2046_v33  ;;  %v1315_v47 = vsel %vm1314_vm0, 1, %v2144_v2  ;;  %v1307_v11 = vshrl.u32 %v1303_v15, 16 }
  0xd2   : > { %v877_v25 = vsub.s32 32, %v876_v59  ;;  %v881_v57 = vsub.s32 4294967266, %v876_v59  ;;  %v878_v9 = vshll.u32 %v2509_v0, %v876_v59  ;;  %v1317_v12 = vadd.s32 %v1315_v47, %v1313_v54  ;;  %v382_v47 = vld [vmem:[%s2581_s17] sm:$0xff] }
  0xd3   : > { %v741_v53 = vmul.f32 -0.001358992, %v2558_v37  ;;  %v748_v50 = vmul.f32 -0.00019511016, %v2558_v37  ;;  %v1327_v33 = vmul.u32 %v1323_v48, %v1299_v60  ;;  %v1330_v34 = vshll.u32 %v1326_v44, 16 }
  0xd4   : > { %v879_v7 = vshrl.u32 %v861_v29, %v877_v25  ;;  %v882_v10 = vadd.s32 127, %v881_v57  ;;  %vm1332_vm1 = vc.u32 %v1324_v6, %v1328_v3  ;;  %v1334_v13 = vadd.s32 %v1328_v3, %v1324_v6 }
  0xd5   : > { %v749_v4 = vadd.f32 0.008332121, %v748_v50  ;;  %v742_v14 = vadd.f32 0.041655596, %v741_v53  ;;  %v736_v29 = vsub.s32 4, %v2434_v49  ;;  %v1265_v61 = vshrl.u32 %v3486_v56, %v2461_v45 }
  0xd6   : > { %v880_v41 = vor.u32 %v879_v7, %v878_v9  ;;  %v883_v51 = vshll.u32 %v882_v10, 23  ;;  %v1318_v55 = vadd.s32 %v1317_v12, %v1307_v11  ;;  %v1333_v0 = vsel %vm1332_vm1, 1, %v2144_v2 }
  0xd7   : > { %v750_v21 = vmul.f32 %v749_v4, %v2558_v37  ;;  %v1286_v59 = vsel %vm1284_vm7, %v2490_v32, 2102212464  ;;  %v1335_v60 = vadd.s32 %v1333_v0, %v1327_v33  ;;  %vm1336_vm2 = vc.u32 %v1334_v13, %v1330_v34 }
  0xd8   : > { %v884_v15 = vor.u32 4788187, %v883_v51  ;;  %v743_v48 = vmul.f32 %v742_v14, %v2558_v37  ;;  %v1309_v52 = vshrl.u32 %v2542_v23, 16  ;;  %v1329_v39 = vshrl.u32 %v1325_v46, 16 }
  0xd9   : > { %v1337_v53 = vsel %vm1336_vm2, 1, %v2144_v2  ;;  %v751_v45 = vadd.f32 -0.16666654, %v750_v21  ;;  %v887_v25 = vcvt.s32.f32 %v880_v41  ;;  %v1285_v32 = vsel %vm1281_vm8, %v1265_v61, %v2494_v36  ;;  %v390_v21 = vpop.permute.xlu2 %389 }
  0xda   : > { %v885_v50 = vand.u32 2147483647, %v884_v15  ;;  %v1339_v57 = vadd.s32 %v1337_v53, %v1335_v60  ;;  %v1287_v23 = vsel %vm1283_vm9, %v2487_v24, %v1286_v59  ;;  %v2589_v46 = vadd.s32 %v1318_v55, %v1309_v52 }
  0xdb   : > { %v737_v54 = vsel %vm614_vm12, %v736_v29, %v2434_v49  ;;  %v1331_v4 = vshrl.u32 %v1326_v44, 16  ;;  %v744_v6 = vadd.f32 -0.4999988, %v743_v48  ;;  %v891_v9 = vsub.s32 4, %v2492_v35 }
  0xdc   : > { %v888_v3 = vmul.f32 %v887_v25, %v885_v50  ;;  %v1340_v7 = vadd.s32 %v1339_v57, %v1329_v39  ;;  %v1338_v10 = vadd.s32 %v1334_v13, %v1330_v34  ;;  %v1407_v36 = vand.u32 2139095040, %v2554_v43 }
  0xdd   : > { %v752_v11 = vmul.f32 %v751_v45, %v2558_v37  ;;  %v1288_v24 = vsel %vm1282_vm10, %v1285_v32, %v1287_v23  ;;  %v3482_v49 = vand.u32 2147483647, %v2554_v43  ;;  %v408_v33 = vperm.slane %v382_v47, 0  ;;  %v2630_v23 = vpop.permute.xlu0 %591 }
  0xde   : > { %v889_v12 = vxor.u32 2147483648, %v888_v3  ;;  %v1341_v14 = vadd.s32 %v1340_v7, %v1331_v4  ;;  %vm1344_vm3 = vc.u32 %v2589_v46, %v1338_v10  ;;  %v1408_v44 = vshrl.u32 %v1407_v36, 23 }
  0xdf   : > { %v739_v41 = vsel %vm2538_vm13, 0, %v737_v54  ;;  %vm769_vm4 = vcmp.lt.s32.totalorder %v2286_v27, 0  ;;  %v745_v51 = vmul.f32 %v744_v6, %v2558_v37  ;;  %v1342_v63 = vmul.u32 %v2501_v30, %v1288_v24 }
  0xe0   : > { %v1345_v34 = vadd.s32 1, %v1341_v14  ;;  %v892_v13 = vsel %vm769_vm4, %v891_v9, %v2492_v35  ;;  %v2057_v29 = vadd.s32 4294967169, %v1408_v44  ;;  %v753_v61 = vadd.f32 1.0, %v752_v11 }
  0xe1   : > { %vm2610_vm5 = vcmp.le.f32.partialorder %v767_v31, 0.7853982  ;;  %v890_v0 = vsel %vm769_vm4, %v889_v12, %v888_v3  ;;  %v756_v15 = vadd.s32 3, %v739_v41  ;;  %v1411_v60 = vand.u32 8388607, %v3482_v49  ;;  %v2645_v9 = vpop.permute.xlu2 %394 }
  0xe2   : > { %v1346_v22 = vsel %vm1344_vm3, %v1345_v34, %v1341_v14  ;;  %v1414_v37 = vadd.s32 1, %v2057_v29  ;;  %v409_v48 = vperm.slane %v382_v47, 4  ;;  %v894_v35 = vsel %vm2610_vm5, 0, %v892_v13  ;;  %v2667_v13 = vpop.permute.xlu1 %605 }
  0xe3   : > { %v1347_v59 = vadd.s32 %v1346_v22, %v1342_v63  ;;  %v746_v30 = vadd.f32 1.0, %v745_v51  ;;  %v2621_v31 = vsel %vm2610_vm5, %v2286_v27, %v890_v0  ;;  %v2623_v39 = vperm.slane %v408_v33, 0 }
  0xe4   : > { %vm1415_vm6 = vcmp.gt.s32.totalorder %v1414_v37, 0  ;;  %v754_v53 = vmul.f32 %v753_v61, %v2549_v42  ;;  %v2626_v50 = vand.u32 3, %v756_v15  ;;  %v1412_v57 = vor.u32 8388608, %v1411_v60 }
  0xe5   : > { %v1348_v52 = vadd.s32 536870912, %v1347_v59  ;;  %v1416_v45 = vsel %vm1415_vm6, %v1414_v37, 0  ;;  %v2632_v54 = vperm.slane %v409_v48, 0  ;;  %v2636_v3 = vmul.f32 %v2621_v31, %v2621_v31 }
  0xe6   : > { %v1418_v32 = vand.u32 31, %v1416_v45  ;;  %v911_v4 = vadd.s32 3, %v894_v35  ;;  %v2639_v7 = vmul.f32 %v2623_v39, %v390_v21  ;;  %v763_v42 = vxor.u32 2147483648, %v746_v30 }
  0xe7   : > { %v2628_v25 = vshrl.u32 %v1348_v52, 30  ;;  %v2643_v6 = vmul.f32 %v2632_v54, %v390_v21  ;;  %v760_v36 = vxor.u32 2147483648, %v754_v53  ;;  %v596_v12 = vmul.f32 %v2630_v23, %v580_v18 }
  0xe8   : > { %v2647_v11 = vsub.s32 32, %v1418_v32  ;;  %v2654_v24 = vmul.f32 %v2623_v39, %v2645_v9  ;;  %vm759_vm7 = vcmp.eq.s32.totalorder %v2626_v50, 0  ;;  %v2657_v44 = vshll.u32 %v1412_v57, 8 }
  0xe9   : > { %v1350_v47 = vshll.u32 %v2628_v25, 30  ;;  %vm762_vm8 = vcmp.eq.s32.totalorder %v2626_v50, 2  ;;  %v896_v21 = vmul.f32 -0.001358992, %v2636_v3  ;;  %v2661_v33 = vand.u32 3, %v911_v4 }
  0xea   : > { %v1343_v41 = vadd.s32 %v1338_v10, %v2589_v46  ;;  %v2664_v34 = vsel %vm762_vm8, %v763_v42, %v754_v53  ;;  %v903_v18 = vmul.f32 -0.00019511016, %v2636_v3  ;;  %v2669_v63 = vsel %vm759_vm7, %v746_v30, %v760_v36 }
  0xeb   : > { %v1351_v14 = vsub.s32 %v1347_v59, %v1350_v47  ;;  %v1422_v29 = vshrl.u32 %v3488_v58, %v2647_v11  ;;  %v2676_v61 = vmul.f32 %v2630_v23, %v581_v19  ;;  %v2679_v46 = vadd.f32 %v2667_v13, %v596_v12 }
  0xec   : > { %v1425_v55 = vshrl.u32 %v2150_v62, %v2647_v11  ;;  %v1431_v0 = vshrl.u32 %v2152_v5, %v2647_v11  ;;  %v2686_v22 = vand.u32 65535, %v2657_v44  ;;  %v897_v15 = vadd.f32 0.041655596, %v896_v21 }
  0xed   : > { %vm1352_vm9 = vcmp.lt.s32.totalorder %v1351_v14, 0  ;;  %v1353_v51 = vsub.s32 0, %v1351_v14  ;;  %v1421_v16 = vshll.u32 %v3486_v56, %v1418_v32  ;;  %v1428_v19 = vshrl.u32 %v2151_v1, %v2647_v11 }
  0xee   : > { %v904_v60 = vadd.f32 0.008332121, %v903_v18  ;;  %v2691_v37 = vshrl.u32 %v1416_v45, 5  ;;  %v1424_v48 = vshll.u32 %v3488_v58, %v1418_v32  ;;  %v1430_v35 = vshll.u32 %v2151_v1, %v1418_v32 }
  0xef   : > { %v1354_v10 = vsel %vm1352_vm9, %v1353_v51, %v1351_v14  ;;  %v1423_v52 = vor.u32 %v1422_v29, %v1421_v16  ;;  %v1427_v53 = vshll.u32 %v2150_v62, %v1418_v32  ;;  %v1454_v57 = vshrl.u32 %v2657_v44, 16 }
  0xf0   : > { %v1355_v59 = vclz %v1354_v10  ;;  %v2697_v4 = vor.u32 %v1425_v55, %v1424_v48  ;;  %v1432_v42 = vor.u32 %v1431_v0, %v1430_v35  ;;  %v1433_v47 = vshll.u32 %v2152_v5, %v1418_v32 }
  0xf1   : > { %v1434_v36 = vshrl.u32 %v3483_v8, %v2647_v11  ;;  %v898_v45 = vmul.f32 %v897_v15, %v2636_v3  ;;  %v1429_v12 = vor.u32 %v1428_v19, %v1427_v53  ;;  %v925_v21 = vand.u32 2139095040, %v2679_v46 }
  0xf2   : > { %v2055_v30 = vadd.s32 4294967294, %v1355_v59  ;;  %v905_v18 = vmul.f32 %v904_v60, %v2636_v3  ;;  %vm1436_vm11 = vcmp.lt.s32.totalorder %v2691_v37, 1  ;;  %vm1437_vm12 = vcmp.lt.s32.totalorder %v2691_v37, 2 }
  0xf3   : > { %v1435_v29 = vor.u32 %v1434_v36, %v1433_v47  ;;  %vm1439_vm13 = vcmp.lt.s32.totalorder %v2691_v37, 4  ;;  %vm1438_vm14 = vcmp.lt.s32.totalorder %v2691_v37, 3  ;;  %v1444_v0 = vsel %vm1436_vm11, %v1423_v52, %v2697_v4 }
  0xf4   : > { %vm2056_vm10 = vcmp.lt.s32.totalorder %v2055_v30, 0  ;;  %v1445_v15 = vsel %vm1439_vm13, %v1432_v42, 920167782  ;;  %v1448_v60 = vsel %vm1436_vm11, %v2697_v4, %v1429_v12  ;;  %v3485_v35 = vand.u32 2147483647, %v2679_v46 }
  0xf5   : > { %v1358_v51 = vsel %vm2056_vm10, 0, %v2055_v30  ;;  %v1446_v19 = vsel %vm1438_vm14, %v1429_v12, %v1445_v15  ;;  %v1449_v48 = vsel %vm1439_vm13, %v1435_v29, 1326507024  ;;  %v926_v30 = vshrl.u32 %v925_v21, 23 }
  0xf6   : > { %v1359_v10 = vsub.s32 32, %v1358_v51  ;;  %v1363_v55 = vsub.s32 4294967266, %v1358_v51  ;;  %v1360_v32 = vshll.u32 %v1351_v14, %v1358_v51  ;;  %v1447_v14 = vsel %vm1437_vm12, %v1444_v0, %v1446_v19 }
  0xf7   : > { %v1477_v36 = vand.u32 65535, %v1447_v14  ;;  %v2726_v51 = vadd.f32 -0.4999988, %v898_v45  ;;  %vm1251_vm15 = vcmp.lt.s32.totalorder %v2289_v28, 0  ;;  %v1478_v29 = vshrl.u32 %v1447_v14, 16 }
  0xf8   : > { %v1361_v59 = vshrl.u32 %v1343_v41, %v1359_v10  ;;  %v1364_v16 = vadd.s32 127, %v1363_v55  ;;  %v1450_v41 = vsel %vm1438_vm14, %v1432_v42, %v1449_v48  ;;  %v1420_v10 = vshrl.u32 %v3486_v56, %v2647_v11 }
  0xf9   : > { %v1451_v55 = vsel %vm1437_vm12, %v1448_v60, %v1450_v41  ;;  %v906_v0 = vadd.f32 -0.16666654, %v905_v18  ;;  %vm2735_vm0 = vcmp.le.f32.partialorder %v1249_v40, 0.7853982  ;;  %v1441_v11 = vsel %vm1439_vm13, %v1429_v12, 2102212464 }
  0xfa   : > { %v1362_v53 = vor.u32 %v1361_v59, %v1360_v32  ;;  %v1365_v47 = vshll.u32 %v1364_v16, 23  ;;  %v1455_v32 = vand.u32 65535, %v1451_v55  ;;  %v1456_v45 = vshrl.u32 %v1451_v55, 16 }
  0xfb   : > { %v1440_v15 = vsel %vm1436_vm11, %v1420_v10, %v1423_v52  ;;  %v1480_v59 = vmul.u32 %v1478_v29, %v2686_v22  ;;  %v1481_v16 = vmul.u32 %v1477_v36, %v1454_v57  ;;  %v1479_v14 = vmul.u32 %v1477_v36, %v2686_v22 }
  0xfc   : > { %v1366_v42 = vor.u32 4788187, %v1365_v47  ;;  %v1369_v18 = vcvt.s32.f32 %v1362_v53  ;;  %v1458_v60 = vmul.u32 %v1456_v45, %v2686_v22  ;;  %v1459_v40 = vmul.u32 %v1455_v32, %v1454_v57 }
  0xfd   : > { %v1482_v48 = vmul.u32 %v1478_v29, %v1454_v57  ;;  %v1483_v47 = vshll.u32 %v1480_v59, 16  ;;  %v2048_v41 = vadd.s32 4294967169, %v926_v30  ;;  %vm758_vm1 = vcmp.lt.s32.totalorder %v2626_v50, 2 }
  0xfe   : > { %v1367_v19 = vand.u32 2147483647, %v1366_v42  ;;  %v1457_v52 = vmul.u32 %v1455_v32, %v2686_v22  ;;  %v1460_v10 = vmul.u32 %v1456_v45, %v1454_v57  ;;  %v1461_v12 = vshll.u32 %v1458_v60, 16 }
  0xff   : > { %v1463_v38 = vshll.u32 %v1459_v40, 16  ;;  %v1485_v20 = vshll.u32 %v1481_v16, 16  ;;  %vm1487_vm2 = vc.u32 %v1479_v14, %v1483_v47  ;;  %v1489_v42 = vadd.s32 %v1483_v47, %v1479_v14 }
 0x100   : > { %v1370_v55 = vmul.f32 %v1369_v18, %v1367_v19  ;;  %vm1465_vm3 = vc.u32 %v1457_v52, %v1461_v12  ;;  %v1467_v49 = vadd.s32 %v1461_v12, %v1457_v52  ;;  %v1488_v8 = vsel %vm1487_vm2, 1, %v2144_v2 }
 0x101   : > { %v1442_v30 = vsel %vm1438_vm14, %v2697_v4, %v1441_v11  ;;  %v1466_v36 = vsel %vm1465_vm3, 1, %v2144_v2  ;;  %v1490_v29 = vadd.s32 %v1488_v8, %v1482_v48  ;;  %vm1491_vm4 = vc.u32 %v1489_v42, %v1485_v20 }
 0x102   : > { %v1371_v53 = vxor.u32 2147483648, %v1370_v55  ;;  %v1468_v57 = vadd.s32 %v1466_v36, %v1460_v10  ;;  %vm1469_vm5 = vc.u32 %v1467_v49, %v1463_v38  ;;  %v1492_v32 = vsel %vm1491_vm4, 1, %v2144_v2 }
 0x103   : > { %v1470_v19 = vsel %vm1469_vm5, 1, %v2144_v2  ;;  %v1484_v18 = vshrl.u32 %v1480_v59, 16  ;;  %v1494_v4 = vadd.s32 %v1492_v32, %v1490_v29  ;;  %v1462_v11 = vshrl.u32 %v1458_v60, 16 }
 0x104   : > { %v1372_v22 = vsel %vm1251_vm15, %v1371_v53, %v1370_v55  ;;  %v1472_v14 = vadd.s32 %v1470_v19, %v1468_v57  ;;  %v932_v48 = vadd.s32 1, %v2048_v41  ;;  %v907_v38 = vmul.f32 %v906_v0, %v2636_v3 }
 0x105   : > { %v2759_v45 = vsel %vm2735_vm0, %v2289_v28, %v1372_v22  ;;  %v1373_v49 = vsub.s32 4, %v2628_v25  ;;  %v1486_v47 = vshrl.u32 %v1481_v16, 16  ;;  %v1495_v55 = vadd.s32 %v1494_v4, %v1484_v18 }
 0x106   : > { %v2764_v8 = vmul.f32 %v2759_v45, %v2759_v45  ;;  %v1464_v10 = vshrl.u32 %v1459_v40, 16  ;;  %v1473_v12 = vadd.s32 %v1472_v14, %v1462_v11  ;;  %vm933_vm6 = vcmp.gt.s32.totalorder %v932_v48, 0 }
 0x107   : > { %v765_v59 = vsel %vm758_vm1, %v2669_v63, %v2664_v34  ;;  %v1443_v60 = vsel %vm1437_vm12, %v1440_v15, %v1442_v30  ;;  %v1496_v41 = vadd.s32 %v1495_v55, %v1486_v47  ;;  %v934_v53 = vsel %vm933_vm6, %v932_v48, 0 }
 0x108   : > { %v1385_v52 = vmul.f32 -0.00019511016, %v2764_v8  ;;  %v900_v0 = vmul.f32 %v2726_v51, %v2636_v3  ;;  %v1378_v16 = vmul.f32 -0.001358992, %v2764_v8  ;;  %v2778_v36 = vadd.s32 %v1473_v12, %v1464_v10 }
 0x109   : > { %v2780_v40 = vadd.s32 %v1489_v42, %v1485_v20  ;;  %v908_v29 = vadd.f32 1.0, %v907_v38  ;;  %v1500_v57 = vadd.s32 1, %v1496_v41  ;;  %v936_v32 = vand.u32 31, %v934_v53 }
 0x10a   : > { %v1386_v22 = vadd.f32 0.008332121, %v1385_v52  ;;  %v1374_v50 = vsel %vm1251_vm15, %v1373_v49, %v2628_v25  ;;  %v1497_v34 = vmul.u32 %v2657_v44, %v1443_v60  ;;  %v929_v3 = vand.u32 8388607, %v3485_v35 }
 0x10b   : > { %vm1499_vm7 = vc.u32 %v2778_v36, %v2780_v40  ;;  %v2792_v20 = vmul.f32 %v2632_v54, %v2645_v9  ;;  %vm755_vm8 = vweird.f32 %v2283_v26  ;;  %v2795_v37 = vsub.s32 32, %v936_v32 }
 0x10c   : > { %v1501_v63 = vsel %vm1499_vm7, %v1500_v57, %v1496_v41  ;;  %v2797_v51 = vsel %vm755_vm8, nan, %v765_v59  ;;  %v1379_v25 = vadd.f32 0.041655596, %v1378_v16  ;;  %v2801_v44 = vadd.f32 %v2667_v13, %v2676_v61 }
 0x10d   : > { %v1502_v15 = vadd.s32 %v1501_v63, %v1497_v34  ;;  %v901_v42 = vadd.f32 1.0, %v900_v0  ;;  %v909_v30 = vmul.f32 %v908_v29, %v2621_v31  ;;  %v1376_v9 = vsel %vm2735_vm0, 0, %v1374_v50  ;;  %1232 = vst [vmem:[%s3124_s21] sm:$0xff] %v2797_v51 }
 0x10e   : > { %v1387_v19 = vmul.f32 %v1386_v22, %v2764_v8  ;;  %vm914_vm9 = vcmp.eq.s32.totalorder %v2661_v33, 0  ;;  %vm917_vm10 = vcmp.eq.s32.totalorder %v2661_v33, 2  ;;  %v930_v18 = vor.u32 8388608, %v929_v3 }
 0x10f   : > { %v1503_v26 = vadd.s32 536870912, %v1502_v15  ;;  %v940_v4 = vshrl.u32 %v3488_v58, %v2795_v37  ;;  %v943_v61 = vshrl.u32 %v2150_v62, %v2795_v37  ;;  %v2813_v11 = vshrl.u32 %v934_v53, 5 }
 0x110   : > { %v946_v31 = vshrl.u32 %v2151_v1, %v2795_v37  ;;  %v948_v21 = vshll.u32 %v2151_v1, %v936_v32  ;;  %v949_v14 = vshrl.u32 %v2152_v5, %v2795_v37  ;;  %v1380_v48 = vmul.f32 %v1379_v25, %v2764_v8 }
 0x111   : > { %v2821_v38 = vshrl.u32 %v1503_v26, 30  ;;  %v939_v49 = vshll.u32 %v3486_v56, %v936_v32  ;;  %v942_v47 = vshll.u32 %v3488_v58, %v936_v32  ;;  %v1388_v55 = vadd.f32 -0.16666654, %v1387_v19 }
 0x112   : > { %v945_v52 = vshll.u32 %v2150_v62, %v936_v32  ;;  %v950_v10 = vor.u32 %v949_v14, %v948_v21  ;;  %v3496_v12 = vmov 1326507024   ;;  %v1393_v60 = vadd.s32 3, %v1376_v9 }
 0x113   : > { %v952_v59 = vshrl.u32 %v3496_v12, %v2795_v37  ;;  %v1505_v41 = vshll.u32 %v2821_v38, 30  ;;  %v2829_v53 = vor.u32 %v940_v4, %v939_v49  ;;  %v2831_v0 = vor.u32 %v943_v61, %v942_v47 }
 0x114   : > { %v915_v16 = vxor.u32 2147483648, %v909_v30  ;;  %v918_v29 = vxor.u32 2147483648, %v901_v42  ;;  %v2833_v22 = vor.u32 %v946_v31, %v945_v52  ;;  %v951_v57 = vshll.u32 %v2152_v5, %v936_v32 }
 0x115   : > { %v1381_v50 = vadd.f32 -0.4999988, %v1380_v48  ;;  %v1506_v34 = vsub.s32 %v1502_v15, %v1505_v41  ;;  %vm957_vm11 = vcmp.lt.s32.totalorder %v2813_v11, 4  ;;  %v2837_v3 = vshll.u32 %v930_v18, 8 }
 0x116   : > { %v1389_v63 = vmul.f32 %v1388_v55, %v2764_v8  ;;  %v953_v25 = vor.u32 %v952_v59, %v951_v57  ;;  %vm954_vm12 = vcmp.lt.s32.totalorder %v2813_v11, 1  ;;  %v963_v9 = vsel %vm957_vm11, %v950_v10, 920167782 }
 0x117   : > { %vm1507_vm13 = vcmp.lt.s32.totalorder %v1506_v34, 0  ;;  %v1508_v19 = vsub.s32 0, %v1506_v34  ;;  %vm956_vm14 = vcmp.lt.s32.totalorder %v2813_v11, 3  ;;  %v962_v32 = vsel %vm954_vm12, %v2829_v53, %v2831_v0 }
 0x118   : > { %v2850_v15 = vsel %vm914_vm9, %v901_v42, %v915_v16  ;;  %v2854_v26 = vsel %vm917_vm10, %v918_v29, %v909_v30  ;;  %v2856_v18 = vand.u32 3, %v1393_v60  ;;  %v964_v4 = vsel %vm956_vm14, %v2833_v22, %v963_v9 }
 0x119   : > { %v1382_v61 = vmul.f32 %v1381_v50, %v2764_v8  ;;  %v1509_v31 = vsel %vm1507_vm13, %v1508_v19, %v1506_v34  ;;  %vm955_vm15 = vcmp.lt.s32.totalorder %v2813_v11, 2  ;;  %v966_v42 = vsel %vm954_vm12, %v2831_v0, %v2833_v22 }
 0x11a   : > { %v1390_v21 = vadd.f32 1.0, %v1389_v63  ;;  %v1510_v14 = vclz %v1509_v31  ;;  %v965_v30 = vsel %vm955_vm15, %v962_v32, %v964_v4  ;;  %v967_v48 = vsel %vm957_vm11, %v953_v25, 1326507024 }
 0x11b   : > { %v968_v49 = vsel %vm956_vm14, %v950_v10, %v967_v48  ;;  %v971_v8 = vand.u32 65535, %v2837_v3  ;;  %v972_v47 = vshrl.u32 %v2837_v3, 16  ;;  %v1080_v55 = vand.u32 2139095040, %v2801_v44 }
 0x11c   : > { %v2058_v52 = vadd.s32 4294967294, %v1510_v14  ;;  %v969_v59 = vsel %vm955_vm15, %v966_v42, %v968_v49  ;;  %v995_v60 = vand.u32 65535, %v965_v30  ;;  %v996_v41 = vshrl.u32 %v965_v30, 16 }
 0x11d   : > { %v1498_v16 = vadd.s32 %v2780_v40, %v2778_v36  ;;  %v938_v29 = vshrl.u32 %v3486_v56, %v2795_v37  ;;  %v973_v57 = vand.u32 65535, %v969_v59  ;;  %v974_v10 = vshrl.u32 %v969_v59, 16 }
 0x11e   : > { %v2882_v50 = vadd.f32 1.0, %v1382_v61  ;;  %v2885_v63 = vmul.f32 %v1390_v21, %v2759_v45  ;;  %vm2059_vm0 = vcmp.lt.s32.totalorder %v2058_v52, 0  ;;  %v998_v25 = vmul.u32 %v996_v41, %v971_v8 }
 0x11f   : > { %v1513_v9 = vsel %vm2059_vm0, 0, %v2058_v52  ;;  %v1528_v19 = vsub.s32 4, %v2821_v38  ;;  %v976_v32 = vmul.u32 %v974_v10, %v971_v8  ;;  %v977_v4 = vmul.u32 %v973_v57, %v972_v47 }
 0x120   : > { %v1514_v31 = vsub.s32 32, %v1513_v9  ;;  %v1518_v42 = vsub.s32 4294967266, %v1513_v9  ;;  %v999_v36 = vmul.u32 %v995_v60, %v972_v47  ;;  %v1081_v40 = vshrl.u32 %v1080_v55, 23 }
 0x121   : > { %v1515_v14 = vshll.u32 %v1506_v34, %v1513_v9  ;;  %v975_v37 = vmul.u32 %v973_v57, %v971_v8  ;;  %v979_v30 = vshll.u32 %v976_v32, 16  ;;  %v997_v48 = vmul.u32 %v995_v60, %v971_v8 }
 0x122   : > { %vm913_vm1 = vcmp.lt.s32.totalorder %v2661_v33, 2  ;;  %v1516_v61 = vshrl.u32 %v1498_v16, %v1514_v31  ;;  %v1519_v45 = vadd.s32 127, %v1518_v42  ;;  %v978_v21 = vmul.u32 %v974_v10, %v972_v47 }
 0x123   : > { %v1001_v49 = vshll.u32 %v998_v25, 16  ;;  %v981_v59 = vshll.u32 %v977_v4, 16  ;;  %vm983_vm2 = vc.u32 %v975_v37, %v979_v30  ;;  %v985_v52 = vadd.s32 %v979_v30, %v975_v37 }
 0x124   : > { %v1000_v35 = vmul.u32 %v996_v41, %v972_v47  ;;  %vm1406_vm3 = vcmp.lt.s32.totalorder %v2554_v43, 0  ;;  %v1517_v56 = vor.u32 %v1516_v61, %v1515_v14  ;;  %v1520_v58 = vshll.u32 %v1519_v45, 23 }
 0x125   : > { %v984_v55 = vsel %vm983_vm2, 1, %v2144_v2  ;;  %v1003_v34 = vshll.u32 %v999_v36, 16  ;;  %vm987_vm4 = vc.u32 %v985_v52, %v981_v59  ;;  %vm1005_vm5 = vc.u32 %v997_v48, %v1001_v49 }
 0x126   : > { %v986_v57 = vadd.s32 %v984_v55, %v978_v21  ;;  %v1007_v8 = vadd.s32 %v1001_v49, %v997_v48  ;;  %v3497_v60 = vand.u32 2147483647, %v2554_v43  ;;  %v1521_v10 = vor.u32 4788187, %v1520_v58 }
 0x127   : > { %v959_v47 = vsel %vm957_vm11, %v2833_v22, 2102212464  ;;  %v988_v41 = vsel %vm987_vm4, 1, %v2144_v2  ;;  %v1006_v9 = vsel %vm1005_vm5, 1, %v2144_v2  ;;  %v980_v31 = vshrl.u32 %v976_v32, 16 }
 0x128   : > { %vm2893_vm6 = vcmp.le.f32.partialorder %v3497_v60, 0.7853982  ;;  %v990_v42 = vadd.s32 %v988_v41, %v986_v57  ;;  %v1008_v14 = vadd.s32 %v1006_v9, %v1000_v35  ;;  %vm1009_vm7 = vc.u32 %v1007_v8, %v1003_v34 }
 0x129   : > { %vm910_vm8 = vweird.f32 %v2286_v27  ;;  %v1522_v37 = vand.u32 2147483647, %v1521_v10  ;;  %v1524_v30 = vcvt.s32.f32 %v1517_v56  ;;  %v1010_v48 = vsel %vm1009_vm7, 1, %v2144_v2 }
 0x12a   : > { %v2051_v61 = vadd.s32 4294967169, %v1081_v40  ;;  %v982_v58 = vshrl.u32 %v977_v4, 16  ;;  %v991_v45 = vadd.s32 %v990_v42, %v980_v31  ;;  %v1002_v21 = vshrl.u32 %v998_v25, 16 }
 0x12b   : > { %v1012_v49 = vadd.s32 %v1010_v48, %v1008_v14  ;;  %v1525_v22 = vmul.f32 %v1524_v30, %v1522_v37  ;;  %v958_v59 = vsel %vm954_vm12, %v938_v29, %v2829_v53  ;;  %v960_v35 = vsel %vm956_vm14, %v2831_v0, %v959_v47 }
 0x12c   : > { %v1087_v32 = vadd.s32 1, %v2051_v61  ;;  %v920_v56 = vsel %vm913_vm1, %v2850_v15, %v2854_v26  ;;  %v2914_v40 = vadd.s32 %v991_v45, %v982_v58  ;;  %v1004_v4 = vshrl.u32 %v999_v36, 16 }
 0x12d   : > { %v1013_v25 = vadd.s32 %v1012_v49, %v1002_v21  ;;  %v1400_v52 = vxor.u32 2147483648, %v2882_v50  ;;  %v1526_v55 = vxor.u32 2147483648, %v1525_v22  ;;  %v2917_v57 = vadd.s32 %v1007_v8, %v1003_v34 }
 0x12e   : > { %vm1088_vm9 = vcmp.gt.s32.totalorder %v1087_v32, 0  ;;  %v1529_v53 = vsel %vm1406_vm3, %v1528_v19, %v2821_v38  ;;  %v961_v0 = vsel %vm955_vm15, %v958_v59, %v960_v35  ;;  %v1397_v15 = vxor.u32 2147483648, %v2885_v63 }
 0x12f   : > { %v1014_v29 = vadd.s32 %v1013_v25, %v1004_v4  ;;  %v1089_v33 = vsel %vm1088_vm9, %v1087_v32, 0  ;;  %v1527_v26 = vsel %vm1406_vm3, %v1526_v55, %v1525_v22  ;;  %vm1017_vm10 = vc.u32 %v2914_v40, %v2917_v57 }
 0x130   : > { %v1091_v36 = vand.u32 31, %v1089_v33  ;;  %vm1395_vm11 = vcmp.lt.s32.totalorder %v2856_v18, 2  ;;  %v2933_v38 = vsel %vm2893_vm6, %v2554_v43, %v1527_v26  ;;  %v1077_v19 = vand.u32 2147483647, %v2801_v44 }
 0x131   : > { %v1018_v11 = vadd.s32 1, %v1014_v29  ;;  %v1531_v34 = vsel %vm2893_vm6, 0, %v1529_v53  ;;  %v2940_v8 = vmul.f32 %v2933_v38, %v2933_v38  ;;  %v1015_v60 = vmul.u32 %v2837_v3, %v961_v0 }
 0x132   : > { %v2943_v10 = vsub.s32 32, %v1091_v36  ;;  %v2947_v47 = vsel %vm910_vm8, nan, %v920_v56  ;;  %vm1396_vm12 = vcmp.eq.s32.totalorder %v2856_v18, 0  ;;  %vm1399_vm13 = vcmp.eq.s32.totalorder %v2856_v18, 2 }
 0x133   : > { %v1019_v41 = vsel %vm1017_vm10, %v1018_v11, %v1014_v29  ;;  %v1398_v16 = vsel %vm1396_vm12, %v2882_v50, %v1397_v15  ;;  %v1401_v9 = vsel %vm1399_vm13, %v1400_v52, %v2885_v63  ;;  %v1540_v31 = vmul.f32 -0.00019511016, %v2940_v8  ;;  %1233 = vst [vmem:[%s3124_s21 + $0x8] sm:$0xff] %v2947_v47 }
 0x134   : > { %v1020_v42 = vadd.s32 %v1019_v41, %v1015_v60  ;;  %v1533_v3 = vmul.f32 -0.001358992, %v2940_v8  ;;  %v1548_v14 = vadd.s32 3, %v1531_v34  ;;  %v1084_v27 = vand.u32 8388607, %v1077_v19 }
 0x135   : > { %v1104_v37 = vshrl.u32 %v2152_v5, %v2943_v10  ;;  %v1098_v48 = vshrl.u32 %v2150_v62, %v2943_v10  ;;  %v1101_v50 = vshrl.u32 %v2151_v1, %v2943_v10  ;;  %v1103_v63 = vshll.u32 %v2151_v1, %v1091_v36 }
 0x136   : > { %v1021_v30 = vadd.s32 536870912, %v1020_v42  ;;  %v1541_v61 = vadd.f32 0.008332121, %v1540_v31  ;;  %v2964_v58 = vshrl.u32 %v1089_v33, 5  ;;  %v3500_v45 = vmov 2475754826  }
 0x137   : > { %v1095_v21 = vshrl.u32 %v3500_v45, %v2943_v10  ;;  %v1107_v49 = vshrl.u32 %v3496_v12, %v2943_v10  ;;  %v1097_v59 = vshll.u32 %v3500_v45, %v1091_v36  ;;  %v1100_v35 = vshll.u32 %v2150_v62, %v1091_v36 }
 0x138   : > { %v2970_v22 = vshrl.u32 %v1021_v30, 30  ;;  %v1105_v32 = vor.u32 %v1104_v37, %v1103_v63  ;;  %v1534_v56 = vadd.f32 0.041655596, %v1533_v3  ;;  %v1085_v4 = vor.u32 8388608, %v1084_v27 }
 0x139   : > { %v3501_v25 = vmov 683565275   ;;  %v1106_v55 = vshll.u32 %v2152_v5, %v1091_v36  ;;  %v2978_v53 = vsel %vm1395_vm11, %v1398_v16, %v1401_v9  ;;  %v2981_v29 = vor.u32 %v1098_v48, %v1097_v59 }
 0x13a   : > { %v1094_v52 = vshll.u32 %v3501_v25, %v1091_v36  ;;  %v1023_v0 = vshll.u32 %v2970_v22, 30  ;;  %v2983_v33 = vor.u32 %v1101_v50, %v1100_v35  ;;  %v1542_v15 = vmul.f32 %v1541_v61, %v2940_v8 }
 0x13b   : > { %v1108_v11 = vor.u32 %v1107_v49, %v1106_v55  ;;  %vm1112_vm14 = vcmp.lt.s32.totalorder %v2964_v58, 4  ;;  %v2987_v34 = vand.u32 3, %v1548_v14  ;;  %v3502_v36 = vperm.slane %v2264_v17, 0 }
 0x13c   : > { %v1096_v26 = vor.u32 %v1095_v21, %v1094_v52  ;;  %v1024_v60 = vsub.s32 %v1020_v42, %v1023_v0  ;;  %v1118_v18 = vsel %vm1112_vm14, %v1105_v32, 920167782  ;;  %v1535_v16 = vmul.f32 %v1534_v56, %v2940_v8 }
 0x13d   : > { %v1243_v41 = vmul.f32 %v3502_v36, %v2630_v23  ;;  %vm1109_vm15 = vcmp.lt.s32.totalorder %v2964_v58, 1  ;;  %v2996_v9 = vshll.u32 %v1085_v4, 8  ;;  %v3503_v31 = vperm.slane %v2264_v17, 1 }
 0x13e   : > { %vm1025_vm0 = vcmp.lt.s32.totalorder %v1024_v60, 0  ;;  %v1026_v42 = vsub.s32 0, %v1024_v60  ;;  %vm1111_vm1 = vcmp.lt.s32.totalorder %v2964_v58, 3  ;;  %v1121_v14 = vsel %vm1109_vm15, %v2981_v29, %v2983_v33 }
 0x13f   : > { %v3001_v3 = vmul.f32 %v3503_v31, %v2630_v23  ;;  %v1543_v27 = vadd.f32 -0.16666654, %v1542_v15  ;;  %v1117_v37 = vsel %vm1109_vm15, %v1096_v26, %v2981_v29  ;;  %v1119_v17 = vsel %vm1111_vm1, %v2983_v33, %v1118_v18 }
 0x140   : > { %v1122_v23 = vsel %vm1112_vm14, %v1108_v11, 1326507024  ;;  %v1027_v30 = vsel %vm1025_vm0, %v1026_v42, %v1024_v60  ;;  %vm1110_vm2 = vcmp.lt.s32.totalorder %v2964_v58, 2  ;;  %v3020_v50 = vadd.f32 %v1243_v41, %v2667_v13 }
 0x141   : > { %v1123_v48 = vsel %vm1111_vm1, %v1105_v32, %v1122_v23  ;;  %v1536_v63 = vadd.f32 -0.4999988, %v1535_v16  ;;  %v1028_v61 = vclz %v1027_v30  ;;  %v1126_v49 = vand.u32 65535, %v2996_v9 }
 0x142   : > { %v1124_v21 = vsel %vm1110_vm2, %v1121_v14, %v1123_v48  ;;  %v1120_v59 = vsel %vm1110_vm2, %v1117_v37, %v1119_v17  ;;  %v1127_v35 = vshrl.u32 %v2996_v9, 16  ;;  %v1544_v52 = vmul.f32 %v1543_v27, %v2940_v8 }
 0x143   : > { %v1128_v56 = vand.u32 65535, %v1124_v21  ;;  %v1129_v4 = vshrl.u32 %v1124_v21, 16  ;;  %v1016_v32 = vadd.s32 %v2917_v57, %v2914_v40  ;;  %v2049_v55 = vadd.s32 4294967294, %v1028_v61 }
 0x144   : > { %v1093_v0 = vshrl.u32 %v3501_v25, %v2943_v10  ;;  %v1046_v15 = vsub.s32 4, %v2970_v22  ;;  %v1559_v36 = vand.u32 2147483647, %v3020_v50  ;;  %v1537_v41 = vmul.f32 %v1536_v63, %v2940_v8 }
 0x145   : > { %v1131_v11 = vmul.u32 %v1129_v4, %v1126_v49  ;;  %v1132_v18 = vmul.u32 %v1128_v56, %v1127_v35  ;;  %vm2050_vm3 = vcmp.lt.s32.totalorder %v2049_v55, 0  ;;  %v1151_v31 = vshrl.u32 %v1120_v59, 16 }
 0x146   : > { %v3038_v16 = vsel %vm1109_vm15, %v1093_v0, %v1096_v26  ;;  %v1031_v42 = vsel %vm2050_vm3, 0, %v2049_v55  ;;  %v1130_v40 = vmul.u32 %v1128_v56, %v1126_v49  ;;  %v1150_v14 = vand.u32 65535, %v1120_v59 }
 0x147   : > { %v1134_v57 = vshll.u32 %v1131_v11, 16  ;;  %v1545_v27 = vadd.f32 1.0, %v1544_v52  ;;  %vm924_vm4 = vcmp.lt.s32.totalorder %v2679_v46, 0  ;;  %v1032_v10 = vsub.s32 32, %v1031_v42 }
 0x148   : > { %v1036_v37 = vsub.s32 4294967266, %v1031_v42  ;;  %v1133_v17 = vmul.u32 %v1129_v4, %v1127_v35  ;;  %v1033_v23 = vshll.u32 %v1024_v60, %v1031_v42  ;;  %v1136_v30 = vshll.u32 %v1132_v18, 16 }
 0x149   : > { %vm1138_vm5 = vc.u32 %v1130_v40, %v1134_v57  ;;  %v1140_v8 = vadd.s32 %v1134_v57, %v1130_v40  ;;  %v1034_v48 = vshrl.u32 %v1016_v32, %v1032_v10  ;;  %v1153_v61 = vmul.u32 %v1151_v31, %v1126_v49 }
 0x14a   : > { %v1037_v63 = vadd.s32 127, %v1036_v37  ;;  %v1139_v26 = vsel %vm1138_vm5, 1, %v2144_v2  ;;  %v1152_v56 = vmul.u32 %v1150_v14, %v1126_v49  ;;  %v1154_v55 = vmul.u32 %v1150_v14, %v1127_v35 }
 0x14b   : > { %v1141_v21 = vadd.s32 %v1139_v26, %v1133_v17  ;;  %vm1142_vm6 = vc.u32 %v1140_v8, %v1136_v30  ;;  %v3504_v59 = vand.u32 2147483647, %v2679_v46  ;;  %v1035_v4 = vor.u32 %v1034_v48, %v1033_v23 }
 0x14c   : > { %v1038_v60 = vshll.u32 %v1037_v63, 23  ;;  %v1143_v0 = vsel %vm1142_vm6, 1, %v2144_v2  ;;  %v1156_v42 = vshll.u32 %v1153_v61, 16  ;;  %v1546_v32 = vmul.f32 %v1545_v27, %v2933_v38 }
 0x14d   : > { %vm3044_vm7 = vcmp.le.f32.partialorder %v3504_v59, 0.7853982  ;;  %vm1551_vm8 = vcmp.eq.s32.totalorder %v2987_v34, 0  ;;  %v1135_v40 = vshrl.u32 %v1131_v11, 16  ;;  %v1145_v57 = vadd.s32 %v1143_v0, %v1141_v21 }
 0x14e   : > { %v1155_v10 = vmul.u32 %v1151_v31, %v1127_v35  ;;  %v1039_v49 = vor.u32 4788187, %v1038_v60  ;;  %v1158_v14 = vshll.u32 %v1154_v55, 16  ;;  %vm1160_vm9 = vc.u32 %v1152_v56, %v1156_v42 }
 0x14f   : > { %v1162_v37 = vadd.s32 %v1156_v42, %v1152_v56  ;;  %v1538_v17 = vadd.f32 1.0, %v1537_v41  ;;  %vm1554_vm10 = vcmp.eq.s32.totalorder %v2987_v34, 2  ;;  %v1114_v23 = vsel %vm1112_vm14, %v2983_v33, 2102212464 }
 0x150   : > { %v1146_v30 = vadd.s32 %v1145_v57, %v1135_v40  ;;  %v1161_v8 = vsel %vm1160_vm9, 1, %v2144_v2  ;;  %vm1550_vm11 = vcmp.lt.s32.totalorder %v2987_v34, 2  ;;  %v1040_v38 = vand.u32 2147483647, %v1039_v49 }
 0x151   : > { %v1042_v11 = vcvt.s32.f32 %v1035_v4  ;;  %v1163_v27 = vadd.s32 %v1161_v8, %v1155_v10  ;;  %vm1164_vm12 = vc.u32 %v1162_v37, %v1158_v14  ;;  %v1047_v35 = vsel %vm924_vm4, %v1046_v15, %v2970_v22 }
 0x152   : > { %v1137_v41 = vshrl.u32 %v1132_v18, 16  ;;  %v1165_v31 = vsel %vm1164_vm12, 1, %v2144_v2  ;;  %v1562_v48 = vand.u32 2139095040, %v3020_v50  ;;  %v1552_v63 = vxor.u32 2147483648, %v1546_v32 }
 0x153   : > { %v1043_v33 = vmul.f32 %v1042_v11, %v1040_v38  ;;  %v1157_v26 = vshrl.u32 %v1153_v61, 16  ;;  %v1167_v21 = vadd.s32 %v1165_v31, %v1163_v27  ;;  %v1115_v56 = vsel %vm1111_vm1, %v2981_v29, %v1114_v23 }
 0x154   : > { %v1147_v59 = vadd.s32 %v1146_v30, %v1137_v41  ;;  %v1563_v4 = vshrl.u32 %v1562_v48, 23  ;;  %v1566_v60 = vand.u32 8388607, %v1559_v36  ;;  %vm1392_vm13 = vweird.f32 %v2289_v28 }
 0x155   : > { %vm1547_vm14 = vweird.f32 %v2554_v43  ;;  %v1555_v22 = vxor.u32 2147483648, %v1538_v17  ;;  %v1044_v15 = vxor.u32 2147483648, %v1043_v33  ;;  %v1159_v18 = vshrl.u32 %v1154_v55, 16 }
 0x156   : > { %v1168_v0 = vadd.s32 %v1167_v21, %v1157_v26  ;;  %v1049_v61 = vsel %vm3044_vm7, 0, %v1047_v35  ;;  %v1166_v42 = vadd.s32 %v1162_v37, %v1158_v14  ;;  %v3073_v29 = vadd.f32 %v3001_v3, %v2667_v13  ;;  %v3095_v35 = vpop.permute.xlu2 %424 }
 0x157   : > { %v2060_v40 = vadd.s32 4294967169, %v1563_v4  ;;  %v1553_v57 = vsel %vm1551_vm8, %v1538_v17, %v1552_v63  ;;  %v1045_v10 = vsel %vm924_vm4, %v1044_v15, %v1043_v33  ;;  %v1116_v55 = vsel %vm1110_vm2, %v3038_v16, %v1115_v56 }
 0x158   : > { %v1169_v49 = vadd.s32 %v1168_v0, %v1159_v18  ;;  %v3085_v14 = vsel %vm3044_vm7, %v2679_v46, %v1045_v10  ;;  %vm1172_vm15 = vc.u32 %v1147_v59, %v1166_v42  ;;  %v1567_v13 = vor.u32 8388608, %v1566_v60 }
 0x159   : > { %v1569_v3 = vadd.s32 1, %v2060_v40  ;;  %v1556_v37 = vsel %vm1554_vm10, %v1555_v22, %v1546_v32  ;;  %v1050_v17 = vmul.f32 %v3085_v14, %v3085_v14  ;;  %v1066_v23 = vadd.s32 3, %v1049_v61 }
 0x15a   : > { %v1173_v30 = vadd.s32 1, %v1169_v49  ;;  %v1557_v58 = vsel %vm1550_vm11, %v1553_v57, %v1556_v37  ;;  %v1170_v16 = vmul.u32 %v2996_v9, %v1116_v55  ;;  %v1714_v52 = vand.u32 2147483647, %v3073_v29 }
 0x15b   : > { %vm1570_vm0 = vcmp.gt.s32.totalorder %v1569_v3, 0  ;;  %v1051_v8 = vmul.f32 -0.001358992, %v1050_v17  ;;  %v1058_v38 = vmul.f32 -0.00019511016, %v1050_v17  ;;  %v3097_v31 = vshll.u32 %v1567_v13, 8 }
 0x15c   : > { %v1174_v11 = vsel %vm1172_vm15, %v1173_v30, %v1169_v49  ;;  %v1571_v27 = vsel %vm1570_vm0, %v1569_v3, 0  ;;  %v1717_v34 = vand.u32 2139095040, %v3073_v29  ;;  %v3102_v9 = vadd.f32 %v3095_v35, %v2639_v7 }
 0x15d   : > { %v1175_v32 = vadd.s32 %v1174_v11, %v1170_v16  ;;  %v1573_v41 = vand.u32 31, %v1571_v27  ;;  %v1052_v48 = vadd.f32 0.041655596, %v1051_v8  ;;  %v1059_v63 = vadd.f32 0.008332121, %v1058_v38 }
 0x15e   : > { %vm1079_vm1 = vcmp.lt.s32.totalorder %v2801_v44, 0  ;;  %v1403_v33 = vsel %vm1392_vm13, nan, %v2978_v53  ;;  %v1558_v26 = vsel %vm1547_vm14, nan, %v1557_v58  ;;  %v3110_v21 = vand.u32 3, %v1066_v23 }
 0x15f   : > { %v1176_v56 = vadd.s32 536870912, %v1175_v32  ;;  %v1053_v4 = vmul.f32 %v1052_v48, %v1050_v17  ;;  %v1060_v60 = vmul.f32 %v1059_v63, %v1050_v17  ;;  %v3113_v22 = vsub.s32 32, %v1573_v41  ;;  %1869 = vst [vmem:[%s3124_s21 + $0x20] sm:$0xff] %v1403_v33 }
 0x160   : > { %v3117_v7 = vand.u32 8388607, %v1714_v52  ;;  %vm3128_vm2 = vcmp.le.f32.partialorder %v1077_v19, 0.7853982  ;;  %v3133_v53 = vand.u32 65535, %v3097_v31  ;;  %v3136_v15 = vshrl.u32 %v3097_v31, 16 }
 0x161   : > { %v1177_v43 = vshrl.u32 %v1176_v56, 30  ;;  %v1718_v18 = vshrl.u32 %v1717_v34, 23  ;;  %v1054_v0 = vadd.f32 -0.4999988, %v1053_v4  ;;  %v1061_v61 = vadd.f32 -0.16666654, %v1060_v60 }
 0x162   : > { %v3140_v40 = vadd.s32 %v1166_v42, %v1147_v59  ;;  %v3142_v19 = vshrl.u32 %v1571_v27, 5  ;;  %vm1069_vm3 = vcmp.eq.s32.totalorder %v3110_v21, 0  ;;  %vm1072_vm4 = vcmp.eq.s32.totalorder %v3110_v21, 2  ;;  %1870 = vst [vmem:[%s3124_s21 + $0x28] sm:$0xff] %v1558_v26 }
 0x163   : > { %v1178_v57 = vshll.u32 %v1177_v43, 30  ;;  %v1201_v10 = vsub.s32 4, %v1177_v43  ;;  %v1576_v55 = vshll.u32 %v3501_v25, %v1573_v41  ;;  %v1579_v49 = vshll.u32 %v3500_v45, %v1573_v41 }
 0x164   : > { %v1055_v51 = vmul.f32 %v1054_v0, %v1050_v17  ;;  %v1062_v13 = vmul.f32 %v1061_v61, %v1050_v17  ;;  %vm1068_vm5 = vcmp.lt.s32.totalorder %v3110_v21, 2  ;;  %v1577_v59 = vshrl.u32 %v3500_v45, %v3113_v22 }
 0x165   : > { %v1580_v47 = vshrl.u32 %v2150_v62, %v3113_v22  ;;  %vm1065_vm6 = vweird.f32 %v2679_v46  ;;  %v1179_v42 = vsub.s32 %v1175_v32, %v1178_v57  ;;  %v1583_v3 = vshrl.u32 %v2151_v1, %v3113_v22 }
 0x166   : > { %v1586_v37 = vshrl.u32 %v2152_v5, %v3113_v22  ;;  %v1589_v17 = vshrl.u32 %v3496_v12, %v3113_v22  ;;  %v1056_v23 = vadd.f32 1.0, %v1055_v51  ;;  %v1063_v30 = vadd.f32 1.0, %v1062_v13 }
 0x167   : > { %v1582_v58 = vshll.u32 %v2150_v62, %v1573_v41  ;;  %v1585_v16 = vshll.u32 %v2151_v1, %v1573_v41  ;;  %vm1180_vm7 = vcmp.lt.s32.totalorder %v1179_v42, 0  ;;  %v1181_v8 = vsub.s32 0, %v1179_v42 }
 0x168   : > { %v1202_v38 = vsel %vm1079_vm1, %v1201_v10, %v1177_v43  ;;  %v1588_v11 = vshll.u32 %v2152_v5, %v1573_v41  ;;  %v1064_v27 = vmul.f32 %v1063_v30, %v3085_v14  ;;  %v1073_v32 = vxor.u32 2147483648, %v1056_v23 }
 0x169   : > { %v1578_v34 = vor.u32 %v1577_v59, %v1576_v55  ;;  %v1581_v48 = vor.u32 %v1580_v47, %v1579_v49  ;;  %v1182_v63 = vsel %vm1180_vm7, %v1181_v8, %v1179_v42  ;;  %v1584_v33 = vor.u32 %v1583_v3, %v1582_v58 }
 0x16a   : > { %v1587_v26 = vor.u32 %v1586_v37, %v1585_v16  ;;  %v1590_v56 = vor.u32 %v1589_v17, %v1588_v11  ;;  %v1070_v4 = vxor.u32 2147483648, %v1064_v27  ;;  %v1183_v60 = vclz %v1182_v63 }
 0x16b   : > { %v1204_v0 = vsel %vm3128_vm2, 0, %v1202_v38  ;;  %v2063_v61 = vadd.s32 4294967169, %v1718_v18  ;;  %vm1591_vm8 = vcmp.lt.s32.totalorder %v3142_v19, 1  ;;  %vm1592_vm9 = vcmp.lt.s32.totalorder %v3142_v19, 2 }
 0x16c   : > { %vm1593_vm10 = vcmp.lt.s32.totalorder %v3142_v19, 3  ;;  %vm1594_vm11 = vcmp.lt.s32.totalorder %v3142_v19, 4  ;;  %v1071_v14 = vsel %vm1069_vm3, %v1056_v23, %v1070_v4  ;;  %v1074_v41 = vsel %vm1072_vm4, %v1073_v32, %v1064_v27 }
 0x16d   : > { %v2052_v43 = vadd.s32 4294967294, %v1183_v60  ;;  %v1599_v57 = vsel %vm1591_vm8, %v1578_v34, %v1581_v48  ;;  %v1075_v18 = vsel %vm1068_vm5, %v1071_v14, %v1074_v41  ;;  %v1600_v10 = vsel %vm1594_vm11, %v1587_v26, 920167782 }
 0x16e   : > { %v1603_v55 = vsel %vm1591_vm8, %v1581_v48, %v1584_v33  ;;  %v1604_v49 = vsel %vm1594_vm11, %v1590_v56, 1326507024  ;;  %v1076_v51 = vsel %vm1065_vm6, nan, %v1075_v18  ;;  %v1601_v13 = vsel %vm1593_vm10, %v1584_v33, %v1600_v10 }
 0x16f   : > { %vm2053_vm12 = vcmp.lt.s32.totalorder %v2052_v43, 0  ;;  %v1605_v21 = vsel %vm1593_vm10, %v1587_v26, %v1604_v49  ;;  %v1575_v47 = vshrl.u32 %v3501_v25, %v3113_v22  ;;  %v1602_v3 = vsel %vm1592_vm9, %v1599_v57, %v1601_v13  ;;  %1234 = vst [vmem:[%s3124_s21 + $0x10] sm:$0xff] %v1076_v51 }
 0x170   : > { %v1186_v59 = vsel %vm2053_vm12, 0, %v2052_v43  ;;  %v1606_v37 = vsel %vm1592_vm9, %v1603_v55, %v1605_v21  ;;  %v1596_v23 = vsel %vm1594_vm11, %v1584_v33, 2102212464  ;;  %v1221_v58 = vadd.s32 3, %v1204_v0 }
 0x171   : > { %v1187_v46 = vsub.s32 32, %v1186_v59  ;;  %v1191_v17 = vsub.s32 4294967266, %v1186_v59  ;;  %v1610_v30 = vand.u32 65535, %v1606_v37  ;;  %v1611_v16 = vshrl.u32 %v1606_v37, 16 }
 0x172   : > { %v1632_v8 = vand.u32 65535, %v1602_v3  ;;  %v1633_v38 = vshrl.u32 %v1602_v3, 16  ;;  %v1188_v11 = vshll.u32 %v1179_v42, %v1186_v59  ;;  %v1595_v63 = vsel %vm1591_vm8, %v1575_v47, %v1578_v34 }
 0x173   : > { %v1189_v22 = vshrl.u32 %v3140_v40, %v1187_v46  ;;  %v1192_v27 = vadd.s32 127, %v1191_v17  ;;  %v1614_v32 = vmul.u32 %v1610_v30, %v3136_v15  ;;  %v1597_v26 = vsel %vm1593_vm10, %v1581_v48, %v1596_v23 }
 0x174   : > { %v1613_v56 = vmul.u32 %v1611_v16, %v3133_v53  ;;  %v1635_v33 = vmul.u32 %v1633_v38, %v3133_v53  ;;  %v1612_v0 = vmul.u32 %v1610_v30, %v3133_v53  ;;  %v1724_v42 = vadd.s32 1, %v2063_v61 }
 0x175   : > { %v1190_v4 = vor.u32 %v1189_v22, %v1188_v11  ;;  %v1193_v60 = vshll.u32 %v1192_v27, 23  ;;  %v1615_v40 = vmul.u32 %v1611_v16, %v3136_v15  ;;  %v1634_v41 = vmul.u32 %v1632_v8, %v3133_v53 }
 0x176   : > { %v1616_v14 = vshll.u32 %v1613_v56, 16  ;;  %v1636_v43 = vmul.u32 %v1632_v8, %v3136_v15  ;;  %v1618_v57 = vshll.u32 %v1614_v32, 16  ;;  %v1637_v48 = vmul.u32 %v1633_v38, %v3136_v15  ;;  %v3222_v38 = vpop.permute.xlu1 %404 }
 0x177   : > { %v1194_v34 = vor.u32 4788187, %v1193_v60  ;;  %v1638_v18 = vshll.u32 %v1635_v33, 16  ;;  %v1197_v10 = vcvt.s32.f32 %v1190_v4  ;;  %vm1725_vm0 = vcmp.gt.s32.totalorder %v1724_v42, 0 }
 0x178   : > { %vm1620_vm13 = vc.u32 %v1612_v0, %v1616_v14  ;;  %v1622_v55 = vadd.s32 %v1616_v14, %v1612_v0  ;;  %v1640_v49 = vshll.u32 %v1636_v43, 16  ;;  %v1617_v15 = vshrl.u32 %v1613_v56, 16 }
 0x179   : > { %v1195_v51 = vand.u32 2147483647, %v1194_v34  ;;  %v1621_v13 = vsel %vm1620_vm13, 1, %v2144_v2  ;;  %vm1642_vm14 = vc.u32 %v1634_v41, %v1638_v18  ;;  %v1644_v61 = vadd.s32 %v1638_v18, %v1634_v41 }
 0x17a   : > { %v1623_v21 = vadd.s32 %v1621_v13, %v1615_v40  ;;  %vm1624_vm15 = vc.u32 %v1622_v55, %v1618_v57  ;;  %v1643_v53 = vsel %vm1642_vm14, 1, %v2144_v2  ;;  %v1726_v17 = vsel %vm1725_vm0, %v1724_v42, 0 }
 0x17b   : > { %v1198_v59 = vmul.f32 %v1197_v10, %v1195_v51  ;;  %v1625_v47 = vsel %vm1624_vm15, 1, %v2144_v2  ;;  %v1645_v3 = vadd.s32 %v1643_v53, %v1637_v48  ;;  %vm1646_vm3 = vc.u32 %v1644_v61, %v1640_v49 }
 0x17c   : > { %v1627_v37 = vadd.s32 %v1625_v47, %v1623_v21  ;;  %v1647_v46 = vsel %vm1646_vm3, 1, %v2144_v2  ;;  %v1639_v30 = vshrl.u32 %v1635_v33, 16  ;;  %v1728_v8 = vand.u32 31, %v1726_v17 }
 0x17d   : > { %v1199_v23 = vxor.u32 2147483648, %v1198_v59  ;;  %v1649_v16 = vadd.s32 %v1647_v46, %v1645_v3  ;;  %v3226_v11 = vadd.f32 %v3095_v35, %v2643_v6  ;;  %v1598_v22 = vsel %vm1592_vm9, %v1595_v63, %v1597_v26 }
 0x17e   : > { %v1619_v27 = vshrl.u32 %v1614_v32, 16  ;;  %v1628_v4 = vadd.s32 %v1627_v37, %v1617_v15  ;;  %v1641_v60 = vshrl.u32 %v1636_v43, 16  ;;  %v1729_v42 = vsub.s32 32, %v1728_v8 }
 0x17f   : > { %v1200_v56 = vsel %vm1079_vm1, %v1199_v23, %v1198_v59  ;;  %v1650_v0 = vadd.s32 %v1649_v16, %v1639_v30  ;;  %v3239_v6 = vadd.s32 %v1644_v61, %v1640_v49  ;;  %v1722_v35 = vor.u32 8388608, %v3117_v7  ;;  %v3261_v59 = vpop.permute.xlu2 %439 }
 0x180   : > { %v3235_v33 = vsel %vm3128_vm2, %v2801_v44, %v1200_v56  ;;  %v3237_v40 = vadd.s32 %v1628_v4, %v1619_v27  ;;  %v3244_v32 = vand.u32 3, %v1221_v58  ;;  %v1652_v26 = vmul.u32 %v3097_v31, %v1598_v22 }
 0x181   : > { %v1205_v19 = vmul.f32 %v3235_v33, %v3235_v33  ;;  %v1651_v63 = vadd.s32 %v1650_v0, %v1641_v60  ;;  %v3249_v28 = vshrl.u32 %v1726_v17, 5  ;;  %v1731_v14 = vshll.u32 %v3501_v25, %v1728_v8 }
 0x182   : > { %vm1654_vm1 = vc.u32 %v3237_v40, %v3239_v6  ;;  %v1735_v41 = vshrl.u32 %v2150_v62, %v1729_v42  ;;  %v1738_v57 = vshrl.u32 %v2151_v1, %v1729_v42  ;;  %v1732_v58 = vshrl.u32 %v3500_v45, %v1729_v42 }
 0x183   : > { %v1206_v43 = vmul.f32 -0.001358992, %v1205_v19  ;;  %v1213_v34 = vmul.f32 -0.00019511016, %v1205_v19  ;;  %v1655_v7 = vadd.s32 1, %v1651_v63  ;;  %v1734_v48 = vshll.u32 %v3500_v45, %v1728_v8 }
 0x184   : > { %v1737_v31 = vshll.u32 %v2150_v62, %v1728_v8  ;;  %v1741_v18 = vshrl.u32 %v2152_v5, %v1729_v42  ;;  %v1740_v51 = vshll.u32 %v2151_v1, %v1728_v8  ;;  %v1743_v21 = vshll.u32 %v2152_v5, %v1728_v8  ;;  %v3263_v62 = vpop.permute.xlu1 %434 }
 0x185   : > { %v1207_v10 = vadd.f32 0.041655596, %v1206_v43  ;;  %v1214_v55 = vadd.f32 0.008332121, %v1213_v34  ;;  %v1656_v49 = vsel %vm1654_vm1, %v1655_v7, %v1651_v63  ;;  %v1736_v61 = vor.u32 %v1735_v41, %v1734_v48 }
 0x186   : > { %v1657_v13 = vadd.s32 %v1656_v49, %v1652_v26  ;;  %v1744_v53 = vshrl.u32 %v3496_v12, %v1729_v42  ;;  %v1739_v45 = vor.u32 %v1738_v57, %v1737_v31  ;;  %v1742_v15 = vor.u32 %v1741_v18, %v1740_v51 }
 0x187   : > { %v1208_v47 = vmul.f32 %v1207_v10, %v1205_v19  ;;  %v1215_v3 = vmul.f32 %v1214_v55, %v1205_v19  ;;  %vm1561_vm2 = vcmp.lt.s32.totalorder %v3020_v50, 0  ;;  %v3266_v17 = vshll.u32 %v1722_v35, 8  ;;  %v3302_v18 = vpop.permute.xlu2 %459 }
 0x188   : > { %v1658_v37 = vadd.s32 536870912, %v1657_v13  ;;  %v1745_v46 = vor.u32 %v1744_v53, %v1743_v21  ;;  %v1730_v5 = vshrl.u32 %v3501_v25, %v1729_v42  ;;  %v1733_v30 = vor.u32 %v1732_v58, %v1731_v14 }
 0x189   : > { %v1209_v1 = vadd.f32 -0.4999988, %v1208_v47  ;;  %v1216_v23 = vadd.f32 -0.16666654, %v1215_v3  ;;  %vm1224_vm4 = vcmp.eq.s32.totalorder %v3244_v32, 0  ;;  %vm1746_vm6 = vcmp.lt.s32.totalorder %v3249_v28, 1 }
 0x18a   : > { %vm3272_vm5 = vcmp.le.f32.partialorder %v1559_v36, 0.7853982  ;;  %v1659_v16 = vshrl.u32 %v1658_v37, 30  ;;  %vm1747_vm7 = vcmp.lt.s32.totalorder %v3249_v28, 2  ;;  %vm1749_vm8 = vcmp.lt.s32.totalorder %v3249_v28, 4 }
 0x18b   : > { %v1210_v8 = vmul.f32 %v1209_v1, %v1205_v19  ;;  %v1217_v22 = vmul.f32 %v1216_v23, %v1205_v19  ;;  %vm1223_vm9 = vcmp.lt.s32.totalorder %v3244_v32, 2  ;;  %v1755_v25 = vsel %vm1749_vm8, %v1742_v15, 920167782  ;;  %v3286_v19 = vpop.permute.xlu0 %399 }
 0x18c   : > { %v1758_v27 = vsel %vm1746_vm6, %v1736_v61, %v1739_v45  ;;  %vm1220_vm10 = vweird.f32 %v2801_v44  ;;  %v1660_v36 = vshll.u32 %v1659_v16, 30  ;;  %v1683_v4 = vsub.s32 4, %v1659_v16  ;;  %v3304_v10 = vpop.permute.xlu1 %455 }
 0x18d   : > { %vm1748_vm11 = vcmp.lt.s32.totalorder %v3249_v28, 3  ;;  %v1759_v56 = vsel %vm1749_vm8, %v1745_v46, 1326507024  ;;  %v1211_v60 = vadd.f32 1.0, %v1210_v8  ;;  %v1218_v0 = vadd.f32 1.0, %v1217_v22 }
 0x18e   : > { %v1751_v42 = vsel %vm1749_vm8, %v1739_v45, 2102212464  ;;  %v1760_v35 = vsel %vm1748_vm11, %v1742_v15, %v1759_v56  ;;  %v3288_v63 = vsub.s32 %v1657_v13, %v1660_v36  ;;  %v1754_v26 = vsel %vm1746_vm6, %v1733_v30, %v1736_v61 }
 0x18f   : > { %v1756_v14 = vsel %vm1748_vm11, %v1739_v45, %v1755_v25  ;;  %v1761_v41 = vsel %vm1747_vm7, %v1758_v27, %v1760_v35  ;;  %v1219_v43 = vmul.f32 %v1218_v0, %v3235_v33  ;;  %v1228_v34 = vxor.u32 2147483648, %v1211_v60 }
 0x190   : > { %v1684_v7 = vsel %vm1561_vm2, %v1683_v4, %v1659_v16  ;;  %v1763_v57 = vand.u32 65535, %v3266_v17  ;;  %vm1662_vm12 = vcmp.lt.s32.totalorder %v3288_v63, 0  ;;  %v1663_v58 = vsub.s32 0, %v3288_v63 }
 0x191   : > { %v1765_v48 = vand.u32 65535, %v1761_v41  ;;  %v1766_v31 = vshrl.u32 %v1761_v41, 16  ;;  %v1225_v55 = vxor.u32 2147483648, %v1219_v43  ;;  %vm1227_vm13 = vcmp.eq.s32.totalorder %v3244_v32, 2  ;;  %v3337_v41 = vpop.permute.xlu2 %489 }
 0x192   : > { %v1750_v33 = vsel %vm1746_vm6, %v1730_v5, %v1733_v30  ;;  %v1752_v49 = vsel %vm1748_vm11, %v1736_v61, %v1751_v42  ;;  %v1664_v51 = vsel %vm1662_vm12, %v1663_v58, %v3288_v63  ;;  %v1757_v13 = vsel %vm1747_vm7, %v1754_v26, %v1756_v14 }
 0x193   : > { %v1764_v21 = vshrl.u32 %v3266_v17, 16  ;;  %v1768_v53 = vmul.u32 %v1766_v31, %v1763_v57  ;;  %v1226_v47 = vsel %vm1224_vm4, %v1211_v60, %v1225_v55  ;;  %v1229_v3 = vsel %vm1227_vm13, %v1228_v34, %v1219_v43  ;;  %v3334_v27 = vpop.permute.xlu0 %429 }
 0x194   : > { %v1665_v45 = vclz %v1664_v51  ;;  %v1686_v15 = vsel %vm3272_vm5, 0, %v1684_v7  ;;  %v1230_v61 = vsel %vm1223_vm9, %v1226_v47, %v1229_v3  ;;  %v1653_v37 = vadd.s32 %v3239_v6, %v3237_v40  ;;  %v3339_v43 = vpop.permute.xlu1 %463 }
 0x195   : > { %v1769_v46 = vmul.u32 %v1765_v48, %v1764_v21  ;;  %v3325_v1 = vmul.f32 %v2623_v39, %v3222_v38  ;;  %v1231_v23 = vsel %vm1220_vm10, nan, %v1230_v61  ;;  %v1767_v30 = vmul.u32 %v1765_v48, %v1763_v57 }
 0x196   : > { %v2061_v5 = vadd.s32 4294967294, %v1665_v45  ;;  %v1771_v16 = vshll.u32 %v1768_v53, 16  ;;  %v1703_v8 = vadd.s32 3, %v1686_v15  ;;  %v3331_v22 = vsel %vm1747_vm7, %v1750_v33, %v1752_v49  ;;  %1235 = vst [vmem:[%s3124_s21 + $0x18] sm:$0xff] %v1231_v23 }
 0x197   : > { %v1787_v32 = vand.u32 65535, %v1757_v13  ;;  %v1788_v25 = vshrl.u32 %v1757_v13, 16  ;;  %v1770_v40 = vmul.u32 %v1766_v31, %v1764_v21  ;;  %v1773_v44 = vshll.u32 %v1769_v46, 16 }
 0x198   : > { %vm2062_vm14 = vcmp.lt.s32.totalorder %v2061_v5, 0  ;;  %vm1775_vm15 = vc.u32 %v1767_v30, %v1771_v16  ;;  %v1777_v6 = vadd.s32 %v1771_v16, %v1767_v30  ;;  %v1772_v42 = vshrl.u32 %v1768_v53, 16  ;;  %v3352_v30 = vld [vmem:[%s2581_s17] sm:$0xff] }
 0x199   : > { %v1668_v36 = vsel %vm2062_vm14, 0, %v2061_v5  ;;  %v1776_v4 = vsel %vm1775_vm15, 1, %v2144_v2  ;;  %v1790_v56 = vmul.u32 %v1788_v25, %v1763_v57  ;;  %v1789_v35 = vmul.u32 %v1787_v32, %v1763_v57 }
 0x19a   : > { %v1669_v60 = vsub.s32 32, %v1668_v36  ;;  %v1673_v0 = vsub.s32 4294967266, %v1668_v36  ;;  %v1778_v28 = vadd.s32 %v1776_v4, %v1770_v40  ;;  %vm1779_vm0 = vc.u32 %v1777_v6, %v1773_v44 }
 0x19b   : > { %v1791_v26 = vmul.u32 %v1787_v32, %v1764_v21  ;;  %v1793_v14 = vshll.u32 %v1790_v56, 16  ;;  %v1670_v34 = vshll.u32 %v3288_v63, %v1668_v36  ;;  %v1780_v48 = vsel %vm1779_vm0, 1, %v2144_v2  ;;  %v452_v61 = vpop.permute.xlu0 %451 }
 0x19c   : > { %v1671_v7 = vshrl.u32 %v1653_v37, %v1669_v60  ;;  %v1674_v58 = vadd.s32 127, %v1673_v0  ;;  %v1782_v31 = vadd.s32 %v1780_v48, %v1778_v28  ;;  %v1792_v55 = vmul.u32 %v1788_v25, %v1764_v21 }
 0x19d   : > { %v1795_v33 = vshll.u32 %v1791_v26, 16  ;;  %vm1797_vm3 = vc.u32 %v1789_v35, %v1793_v14  ;;  %v1799_v13 = vadd.s32 %v1793_v14, %v1789_v35  ;;  %v3344_v53 = vand.u32 3, %v1703_v8 }
 0x19e   : > { %v1672_v49 = vor.u32 %v1671_v7, %v1670_v34  ;;  %v1675_v51 = vshll.u32 %v1674_v58, 23  ;;  %v1798_v57 = vsel %vm1797_vm3, 1, %v2144_v2  ;;  %v1774_v47 = vshrl.u32 %v1769_v46, 16 }
 0x19f   : > { %v1783_v3 = vadd.s32 %v1782_v31, %v1772_v42  ;;  %v1800_v45 = vadd.s32 %v1798_v57, %v1792_v55  ;;  %vm1801_vm1 = vc.u32 %v1799_v13, %v1795_v33  ;;  %v1807_v15 = vmul.u32 %v3266_v17, %v3331_v22  ;;  %v502_v42 = vpop.permute.xlu2 %501 }
 0x1a0   : > { %v1676_v63 = vor.u32 4788187, %v1675_v51  ;;  %v421_v21 = vmul.f32 %v2632_v54, %v3222_v38  ;;  %v1794_v37 = vshrl.u32 %v1790_v56, 16  ;;  %v1796_v23 = vshrl.u32 %v1791_v26, 16 }
 0x1a1   : > { %v1802_v5 = vsel %vm1801_vm1, 1, %v2144_v2  ;;  %v466_v16 = vperm.slane %v3352_v30, 1  ;;  %v1679_v8 = vcvt.s32.f32 %v1672_v49  ;;  %v467_v25 = vperm.slane %v3352_v30, 5 }
 0x1a2   : > { %v1677_v46 = vand.u32 2147483647, %v1676_v63  ;;  %v1804_v32 = vadd.s32 %v1802_v5, %v1800_v45  ;;  %v3356_v40 = vadd.s32 %v1783_v3, %v1774_v47  ;;  %v418_v17 = vmul.f32 %v2623_v39, %v3286_v19  ;;  %v498_v39 = vpop.permute.xlu1 %497 }
 0x1a3   : > { %v419_v38 = vmul.f32 %v2632_v54, %v3286_v19  ;;  %v470_v22 = vperm.slane %v466_v16, 1  ;;  %v3362_v2 = vadd.s32 %v1799_v13, %v1795_v33  ;;  %v3364_v44 = vperm.slane %v467_v25, 1 }
 0x1a4   : > { %v1680_v6 = vmul.f32 %v1679_v8, %v1677_v46  ;;  %v1805_v36 = vadd.s32 %v1804_v32, %v1794_v37  ;;  %v446_v4 = vadd.f32 %v3263_v62, %v418_v17  ;;  %v504_v60 = vperm.slane %v3352_v30, 2 }
 0x1a5   : > { %v447_v56 = vadd.f32 %v3263_v62, %v419_v38  ;;  %v505_v0 = vperm.slane %v3352_v30, 6  ;;  %v476_v54 = vmul.f32 %v470_v22, %v3302_v18  ;;  %v477_v19 = vmul.f32 %v3364_v44, %v3302_v18 }
 0x1a6   : > { %v1681_v28 = vxor.u32 2147483648, %v1680_v6  ;;  %v1806_v35 = vadd.s32 %v1805_v36, %v1796_v23  ;;  %vm1809_vm4 = vc.u32 %v3356_v40, %v3362_v2  ;;  %v3377_v26 = vadd.f32 %v3261_v59, %v3325_v1 }
 0x1a7   : > { %v3380_v62 = vadd.f32 %v3261_v59, %v421_v21  ;;  %v474_v14 = vmul.f32 %v470_v22, %v3304_v10  ;;  %v444_v58 = vadd.f32 %v3334_v27, %v2654_v24  ;;  %v475_v18 = vmul.f32 %v3364_v44, %v3304_v10  ;;  %v494_v24 = vpop.permute.xlu0 %493  ;;  %v532_v32 = vpop.permute.xlu2 %531 }
 0x1a8   : > { %v1682_v34 = vsel %vm1561_vm2, %v1681_v28, %v1680_v6  ;;  %v1810_v7 = vadd.s32 1, %v1806_v35  ;;  %v445_v59 = vadd.f32 %v3334_v27, %v2792_v20  ;;  %v508_v48 = vperm.slane %v504_v60, 2 }
 0x1a9   : > { %v3392_v1 = vsel %vm3272_vm5, %v3020_v50, %v1682_v34  ;;  %v509_v31 = vperm.slane %v505_v0, 2  ;;  %v484_v49 = vadd.f32 %v476_v54, %v446_v4  ;;  %v485_v51 = vadd.f32 %v477_v19, %v447_v56 }
 0x1aa   : > { %v1687_v55 = vmul.f32 %v3392_v1, %v3392_v1  ;;  %v1811_v33 = vsel %vm1809_vm4, %v1810_v7, %v1806_v35  ;;  %v3399_v10 = vmul.f32 %v508_v48, %v3337_v41  ;;  %v482_v13 = vadd.f32 %v474_v14, %v444_v58  ;;  %v528_v17 = vpop.permute.xlu1 %527 }
 0x1ab   : > { %v1812_v57 = vadd.s32 %v1811_v33, %v1807_v15  ;;  %v3402_v12 = vmul.f32 %v509_v31, %v3337_v41  ;;  %v483_v20 = vadd.f32 %v475_v18, %v445_v59  ;;  %v472_v27 = vmul.f32 %v470_v22, %v452_v61 }
 0x1ac   : > { %v1688_v47 = vmul.f32 -0.001358992, %v1687_v55  ;;  %v1695_v3 = vmul.f32 -0.00019511016, %v1687_v55  ;;  %v473_v63 = vmul.f32 %v3364_v44, %v452_v61  ;;  %v3405_v21 = vmul.f32 %v508_v48, %v502_v42 }
 0x1ad   : > { %v1813_v45 = vadd.s32 536870912, %v1812_v57  ;;  %v512_v37 = vmul.f32 %v508_v48, %v494_v24  ;;  %v513_v15 = vmul.f32 %v509_v31, %v494_v24  ;;  %v542_v16 = vperm.slane %v3352_v30, 3 }
 0x1ae   : > { %v1689_v23 = vadd.f32 0.041655596, %v1688_v47  ;;  %v1696_v5 = vadd.f32 0.008332121, %v1695_v3  ;;  %v517_v41 = vmul.f32 %v509_v31, %v502_v42  ;;  %v478_v8 = vmul.f32 %v470_v22, %v3339_v43 }
 0x1af   : > { %v3408_v46 = vshrl.u32 %v1813_v45, 30  ;;  %v543_v25 = vperm.slane %v3352_v30, 7  ;;  %v520_v6 = vadd.f32 %v512_v37, %v482_v13  ;;  %v546_v36 = vperm.slane %v542_v16, 3  ;;  %v536_v34 = vpop.permute.xlu0 %535 }
 0x1b0   : > { %v1690_v38 = vmul.f32 %v1689_v23, %v1687_v55  ;;  %v1697_v61 = vmul.f32 %v1696_v5, %v1687_v55  ;;  %v521_v56 = vadd.f32 %v513_v15, %v483_v20  ;;  %v514_v0 = vmul.f32 %v508_v48, %v498_v39 }
 0x1b1   : > { %v1815_v4 = vshll.u32 %v3408_v46, 30  ;;  %v547_v60 = vperm.slane %v543_v25, 3  ;;  %v550_v54 = vmul.f32 %v546_v36, %v532_v32  ;;  %v515_v42 = vmul.f32 %v509_v31, %v498_v39 }
 0x1b2   : > { %v1691_v28 = vadd.f32 -0.4999988, %v1690_v38  ;;  %v1698_v35 = vadd.f32 -0.16666654, %v1697_v61  ;;  %v480_v22 = vadd.f32 %v472_v27, %v3102_v9  ;;  %v479_v30 = vmul.f32 %v3364_v44, %v3339_v43  ;;  %v540_v27 = vpop.permute.xlu1 %539 }
 0x1b3   : > { %v3413_v19 = vsub.s32 %v1812_v57, %v1815_v4  ;;  %v551_v14 = vmul.f32 %v547_v60, %v532_v32  ;;  %vm1705_vm2 = vcmp.lt.s32.totalorder %v3344_v53, 2  ;;  %v558_v39 = vadd.f32 %v550_v54, %v520_v6 }
 0x1b4   : > { %v1692_v7 = vmul.f32 %v1691_v28, %v1687_v55  ;;  %v1699_v58 = vmul.f32 %v1698_v35, %v1687_v55  ;;  %v522_v18 = vadd.f32 %v514_v0, %v484_v49  ;;  %vm1702_vm5 = vweird.f32 %v3020_v50 }
 0x1b5   : > { %vm1817_vm6 = vcmp.lt.s32.totalorder %v3413_v19, 0  ;;  %v1818_v9 = vsub.s32 0, %v3413_v19  ;;  %v481_v43 = vadd.f32 %v473_v63, %v3226_v11  ;;  %v559_v44 = vadd.f32 %v551_v14, %v521_v56  ;;  %566 = vst [vmem:[%s3423_s28 + $0x10] sm:$0xff] %v558_v39 }
 0x1b6   : > { %v1693_v59 = vadd.f32 1.0, %v1692_v7  ;;  %v1700_v48 = vadd.f32 1.0, %v1699_v58  ;;  %v523_v31 = vadd.f32 %v515_v42, %v485_v51  ;;  %v552_v33 = vmul.f32 %v546_v36, %v536_v34 }
 0x1b7   : > { %v1819_v55 = vsel %vm1817_vm6, %v1818_v9, %v3413_v19  ;;  %v486_v24 = vadd.f32 %v478_v8, %v3377_v26  ;;  %v487_v49 = vadd.f32 %v479_v30, %v3380_v62  ;;  %567 = vst [vmem:[%s3423_s28 + $0x18] sm:$0xff] %v559_v44  ;;  %v553_v57 = vmul.f32 %v547_v60, %v536_v34 }
 0x1b8   : > { %v1701_v13 = vmul.f32 %v1700_v48, %v3392_v1  ;;  %v1710_v47 = vxor.u32 2147483648, %v1693_v59  ;;  %v1820_v11 = vclz %v1819_v55  ;;  %v560_v3 = vadd.f32 %v552_v33, %v522_v18 }
 0x1b9   : > { %vm1706_vm7 = vcmp.eq.s32.totalorder %v3344_v53, 0  ;;  %vm1709_vm8 = vcmp.eq.s32.totalorder %v3344_v53, 2  ;;  %v561_v51 = vadd.f32 %v553_v57, %v523_v31  ;;  %v518_v20 = vadd.f32 %v3399_v10, %v480_v22 }
 0x1ba   : > { %v1707_v26 = vxor.u32 2147483648, %v1701_v13  ;;  %v1711_v45 = vsel %vm1709_vm8, %v1710_v47, %v1701_v13  ;;  %v2064_v63 = vadd.s32 4294967294, %v1820_v11  ;;  %568 = vst [vmem:[%s3423_s28 + $0x20] sm:$0xff] %v560_v3  ;;  %v519_v62 = vadd.f32 %v3402_v12, %v481_v43 }
 0x1bb   : > { %569 = vst [vmem:[%s3423_s28 + $0x28] sm:$0xff] %v561_v51  ;;  %v548_v37 = vmul.f32 %v546_v36, %v528_v17  ;;  %v549_v1 = vmul.f32 %v547_v60, %v528_v17  ;;  %v524_v23 = vadd.f32 %v3405_v21, %v486_v24  ;;  %v525_v5 = vadd.f32 %v517_v41, %v487_v49 }
 0x1bc   : > { %v1708_v15 = vsel %vm1706_vm7, %v1693_v59, %v1707_v26  ;;  %vm2065_vm9 = vcmp.lt.s32.totalorder %v2064_v63, 0  ;;  %v554_v16 = vmul.f32 %v546_v36, %v540_v27  ;;  %v555_v8 = vmul.f32 %v547_v60, %v540_v27 }
 0x1bd   : > { %v1712_v10 = vsel %vm1705_vm2, %v1708_v15, %v1711_v45  ;;  %v1823_v32 = vsel %vm2065_vm9, 0, %v2064_v63  ;;  %v556_v25 = vadd.f32 %v548_v37, %v518_v20  ;;  %v557_v12 = vadd.f32 %v549_v1, %v519_v62 }
 0x1be   : > { %v1713_v17 = vsel %vm1702_vm5, nan, %v1712_v10  ;;  %v1808_v21 = vadd.s32 %v3362_v2, %v3356_v40  ;;  %v1824_v41 = vsub.s32 32, %v1823_v32  ;;  %v1828_v38 = vsub.s32 4294967266, %v1823_v32 }
 0x1bf   : > { %1871 = vst [vmem:[%s3124_s21 + $0x30] sm:$0xff] %v1713_v17  ;;  %v562_v61 = vadd.f32 %v554_v16, %v524_v23  ;;  %v563_v6 = vadd.f32 %v555_v8, %v525_v5  ;;  %v1825_v53 = vshll.u32 %v3413_v19, %v1823_v32  ;;  %vm1716_vm10 = vcmp.lt.s32.totalorder %v3073_v29, 0 }
 0x1c0   : > { %v1826_v36 = vshrl.u32 %v1808_v21, %v1824_v41  ;;  %v1829_v4 = vadd.s32 127, %v1828_v38  ;;  %564 = vst [vmem:[%s3423_s28] sm:$0xff] %v556_v25  ;;  %vm1715_vm11 = vcmp.le.f32.partialorder %v1714_v52, 0.7853982  ;;  %v1838_v54 = vsub.s32 4, %v3408_v46 }
 0x1c1   : > { %565 = vst [vmem:[%s3423_s28 + $0x8] sm:$0xff] %v557_v12  ;;  %vm1857_vm15 = vweird.f32 %v3073_v29 }
 0x1c2   : > { %v1827_v56 = vor.u32 %v1826_v36, %v1825_v53  ;;  %v1830_v60 = vshll.u32 %v1829_v4, 23  ;;  %570 = vst [vmem:[%s3423_s28 + $0x30] sm:$0xff] %v562_v61  ;;  %v1839_v14 = vsel %vm1716_vm10, %v1838_v54, %v3408_v46 }
 0x1c3   : > { %571 = vst [vmem:[%s3423_s28 + $0x38] sm:$0xff] %v563_v6  ;;  %v1841_v58 = vsel %vm1715_vm11, 0, %v1839_v14 }
 0x1c4   : > { %v1831_v50 = vor.u32 4788187, %v1830_v60  ;;  %v1834_v28 = vcvt.s32.f32 %v1827_v56  ;;  %v1858_v44 = vadd.s32 3, %v1841_v58 }
 0x1c6   : > { %v1832_v0 = vand.u32 2147483647, %v1831_v50  ;;  %v1859_v33 = vand.u32 3, %v1858_v44 }
 0x1c8   : > { %v1835_v35 = vmul.f32 %v1834_v28, %v1832_v0  ;;  %vm1861_vm12 = vcmp.eq.s32.totalorder %v1859_v33, 0  ;;  %vm1864_vm13 = vcmp.eq.s32.totalorder %v1859_v33, 2  ;;  %vm1860_vm14 = vcmp.lt.s32.totalorder %v1859_v33, 2 }
 0x1ca   : > { %v1836_v40 = vxor.u32 2147483648, %v1835_v35 }
 0x1cc   : > { %v1837_v2 = vsel %vm1716_vm10, %v1836_v40, %v1835_v35 }
 0x1cd   : > { %v1840_v42 = vsel %vm1715_vm11, %v3073_v29, %v1837_v2 }
 0x1ce   : > { %v1842_v19 = vmul.f32 %v1840_v42, %v1840_v42 }
 0x1d0   : > { %v1843_v22 = vmul.f32 -0.001358992, %v1842_v19  ;;  %v1850_v30 = vmul.f32 -0.00019511016, %v1842_v19 }
 0x1d2   : > { %v1844_v34 = vadd.f32 0.041655596, %v1843_v22  ;;  %v1851_v7 = vadd.f32 0.008332121, %v1850_v30 }
 0x1d4   : > { %v1845_v39 = vmul.f32 %v1844_v34, %v1842_v19  ;;  %v1852_v18 = vmul.f32 %v1851_v7, %v1842_v19 }
 0x1d6   : > { %v1846_v9 = vadd.f32 -0.4999988, %v1845_v39  ;;  %v1853_v43 = vadd.f32 -0.16666654, %v1852_v18 }
 0x1d8   : > { %v1847_v59 = vmul.f32 %v1846_v9, %v1842_v19  ;;  %v1854_v52 = vmul.f32 %v1853_v43, %v1842_v19 }
 0x1da   : > { %v1848_v48 = vadd.f32 1.0, %v1847_v59  ;;  %v1855_v31 = vadd.f32 1.0, %v1854_v52 }
 0x1dc   : > { %v1856_v55 = vmul.f32 %v1855_v31, %v1840_v42  ;;  %v1865_v24 = vxor.u32 2147483648, %v1848_v48 }
 0x1de   : > { %v1862_v49 = vxor.u32 2147483648, %v1856_v55  ;;  %v1866_v57 = vsel %vm1864_vm13, %v1865_v24, %v1856_v55 }
 0x1e0   : > { %v1863_v46 = vsel %vm1861_vm12, %v1848_v48, %v1862_v49 }
 0x1e1   : > { %v1867_v13 = vsel %vm1860_vm14, %v1863_v46, %v1866_v57 }
 0x1e2   : > { %v1868_v47 = vsel %vm1857_vm15, nan, %v1867_v13 }
 0x1e3   : > { %1872 = vst [vmem:[%s3124_s21 + $0x38] sm:$0xff] %v1868_v47 }
 0x1e4 PF: > { %s18_s26 = sadd.s32 1, %s2142_s26   ;;  %s3511_s24 = smov %s2138_s25 }
 0x1e5   : > { %p15_p5 = scmp.ge.s32.totalorder %s18_s26, 4   ;;  %s3512_s25 = smov %s3514_s27 }
 0x1e7   :  { %17 = sbr.rel (!%p15_p5) target bundleno = 2 (0x2), region = 90 }

</bundles_post_ra>
